<compile_context>
chip_gen: v6e
topology: v6e:2x2x1
jax: 0.10.0
libtpu: 0.0.40
codegen_flags: <defaults>
</compile_context>

<pallas_src>
import functools

import numpy as np
import jax
import jax.numpy as jnp
from jax.experimental import pallas as pl
from jax.experimental.pallas import tpu as pltpu

# ---- scaled-down configuration (real module: outdim=4096, OUTPUT_DIM=1024+) ----
CIN = 4              # input image channels
OUTPUT_DIM = 32      # backbone.OUTPUT_DIM (scaled down)
OUTDIM = 256         # head width (4096 in the real module, scaled down)
NUM_CLASSES = 8      # cfg.MODEL_NUM_CLASSES
CPAD = 128           # lane-dense padded class dim for the cls kernel output
OUTPUT_STRIDE = 8    # cfg.MODEL_OUTPUT_STRIDE
DILATION = 12        # conv_fov dilation / padding

COMPUTE_DTYPE = jnp.bfloat16
VMEM_LIMIT = 32 * 1024 * 1024     # leaves double-buffer headroom on v7x (64 MiB)


# ------------------------------ Pallas kernels ------------------------------

def _maxpool3x3_kernel(xp_ref, o_ref):
    """MaxPool2d(3, stride=1, padding=1) on NHWC, channel-tiled.

    The input block is the already (-inf)-padded feature map (padded once in
    the wrapper), so the pool is just a separable 3-tap max: shifted slices
    along W, then along H.  No scratch, no in-kernel fills."""
    _, h, w, _ = o_ref.shape
    wmax = jnp.maximum(jnp.maximum(xp_ref[:, :, 0:w, :],
                                   xp_ref[:, :, 1:w + 1, :]),
                       xp_ref[:, :, 2:w + 2, :])
    out = jnp.maximum(jnp.maximum(wmax[:, 0:h, :, :],
                                  wmax[:, 1:h + 1, :, :]),
                      wmax[:, 2:h + 2, :, :])
    o_ref[...] = out.astype(o_ref.dtype)


def _fused_head_kernel(xs_ref, wf_ref, bf_ref, w2_ref, b2_ref, wc_ref, bc_ref,
                       o_ref, acc_ref):
    """conv_fov (single K=9*cin dot per tile) + ReLU, fused with conv_fov2
    (1x1 + ReLU) and cls_conv (1x1).

    Grid = tiles of OUTDIM; OUTDIM is both the cout of conv_fov and the
    reduction axis of conv_fov2, so neither the conv_fov output nor the
    OUTDIM-wide conv_fov2 activation ever leaves VMEM.  Only a lane-dense
    (m, CPAD) bf16 logits block is written to HBM."""
    k = pl.program_id(0)

    @pl.when(k == 0)
    def _():
        acc_ref[...] = jnp.zeros_like(acc_ref)

    # conv_fov tile + bias + ReLU (dropout1 = identity in eval mode)
    feat = jnp.dot(xs_ref[...], wf_ref[...], preferred_element_type=jnp.float32)
    feat = jnp.maximum(feat + bf_ref[...], 0.0).astype(w2_ref.dtype)
    # partial conv_fov2 reduction over this OUTDIM tile
    acc_ref[...] += jnp.dot(feat, w2_ref[...], preferred_element_type=jnp.float32)

    @pl.when(k == pl.num_programs(0) - 1)
    def _():
        feat2 = jnp.maximum(acc_ref[...] + b2_ref[...], 0.0)   # conv_fov2 + ReLU
        # dropout2 = identity in eval mode; cls_conv is a 1x1 projection
        logits = jnp.dot(feat2.astype(wc_ref.dtype), wc_ref[...],
                         preferred_element_type=jnp.float32) + bc_ref[...]
        o_ref[...] = logits.astype(o_ref.dtype)


def _matmul_kernel(a_ref, b_ref, o_ref):
    """One MXU dot per block (used by the two bilinear-interp passes)."""
    o_ref[...] = jnp.dot(a_ref[...], b_ref[...],
                         preferred_element_type=jnp.float32).astype(o_ref.dtype)


# ------------------------------ op wrappers --------------------------------

def maxpool3x3_s1_p1(x_nhwc, out_dtype):
    """MaxPool2d(3,1,1): channel-tiled Pallas kernel, padding done once here."""
    n, h, w, c = x_nhwc.shape
    neg = jnp.finfo(x_nhwc.dtype).min
    xp = jnp.pad(x_nhwc, ((0, 0), (1, 1), (1, 1), (0, 0)), constant_values=neg)
    tc = 128 if c % 128 == 0 else c
    return pl.pallas_call(
        _maxpool3x3_kernel,
        out_shape=jax.ShapeDtypeStruct((n, h, w, c), out_dtype),
        grid=(c // tc,),
        in_specs=[pl.BlockSpec((n, h + 2, w + 2, tc), lambda j: (0, 0, 0, j))],
        out_specs=pl.BlockSpec((n, h, w, tc), lambda j: (0, 0, 0, j)),
        compiler_params=pltpu.CompilerParams(
            dimension_semantics=("parallel",),
            vmem_limit_bytes=VMEM_LIMIT),
    )(xp)


def fused_head(slab, w_fov, b_fov, w_fov2, b_fov2, w_cls, b_cls):
    """conv_fov(3x3 dil)+ReLU -> conv_fov2(1x1)+ReLU -> cls_conv(1x1), fused."""
    m, k1 = slab.shape                 # k1 = 9 * OUTPUT_DIM
    kdim = w_fov.shape[1]              # OUTDIM
    cpad = w_cls.shape[1]
    tk = 256 if kdim % 256 == 0 else (128 if kdim % 128 == 0 else kdim)
    flops = 2 * m * k1 * kdim + 2 * m * kdim * kdim + 2 * m * kdim * cpad
    bytes_accessed = (slab.size * 2 + w_fov.size * 2 + w_fov2.size * 2
                      + w_cls.size * 2 + b_fov.size * 4 + b_fov2.size * 4
                      + b_cls.size * 4 + m * cpad * 2)
    # TODO(synk): at real scale (m ~ 16k, OUTDIM=4096) also tile the M (spatial)
    # dimension with halo DMA and build the im2col slab in-kernel per M tile.
    return pl.pallas_call(
        _fused_head_kernel,
        out_shape=jax.ShapeDtypeStruct((m, cpad), COMPUTE_DTYPE),
        grid=(kdim // tk,),
        in_specs=[
            pl.BlockSpec((m, k1), lambda k: (0, 0)),        # im2col slab (resident)
            pl.BlockSpec((k1, tk), lambda k: (0, k)),       # conv_fov weight tile
            pl.BlockSpec((1, tk), lambda k: (0, k)),        # conv_fov bias tile
            pl.BlockSpec((tk, kdim), lambda k: (k, 0)),     # conv_fov2 weight tile
            pl.BlockSpec((1, kdim), lambda k: (0, 0)),      # conv_fov2 bias
            pl.BlockSpec((kdim, cpad), lambda k: (0, 0)),   # cls weight (lane-padded)
            pl.BlockSpec((1, cpad), lambda k: (0, 0)),      # cls bias
        ],
        out_specs=pl.BlockSpec((m, cpad), lambda k: (0, 0)),
        scratch_shapes=[pltpu.VMEM((m, kdim), jnp.float32)],
        compiler_params=pltpu.CompilerParams(
            dimension_semantics=("arbitrary",),             # K reduction axis
            vmem_limit_bytes=VMEM_LIMIT),
        cost_estimate=pl.CostEstimate(flops=flops, transcendentals=0,
                                      bytes_accessed=bytes_accessed),
    )(slab, w_fov, b_fov, w_fov2, b_fov2, w_cls, b_cls)


def pallas_matmul(a, b, out_dtype, tm=None):
    """(m, k) @ (k, n) with f32 MXU accumulation, optionally M-tiled."""
    m, k = a.shape
    _, nn = b.shape
    if tm is None or m % tm != 0:
        tm = m
    return pl.pallas_call(
        _matmul_kernel,
        out_shape=jax.ShapeDtypeStruct((m, nn), out_dtype),
        grid=(m // tm,),
        in_specs=[pl.BlockSpec((tm, k), lambda i: (i, 0)),
                  pl.BlockSpec((k, nn), lambda i: (0, 0))],
        out_specs=pl.BlockSpec((tm, nn), lambda i: (i, 0)),
        compiler_params=pltpu.CompilerParams(
            dimension_semantics=("parallel",),
            vmem_limit_bytes=VMEM_LIMIT),
    )(a, b)


def _interp_matrix(out_size, in_size):
    """Host-built row-stochastic bilinear weights, align_corners=True."""
    if out_size == 1:
        src = np.zeros((1,), np.float64)
    else:
        src = np.arange(out_size, dtype=np.float64) * (in_size - 1) / (out_size - 1)
    lo = np.clip(np.floor(src).astype(np.int64), 0, in_size - 1)
    hi = np.clip(lo + 1, 0, in_size - 1)
    frac = (src - lo).astype(np.float32)
    m = np.zeros((out_size, in_size), np.float32)
    rows = np.arange(out_size)
    m[rows, lo] += 1.0 - frac
    m[rows, hi] += frac
    return m


def bilinear_upsample_nchw(logits_flat, n, hb, wb, num_classes, out_h, out_w):
    """F.interpolate(bilinear, align_corners=True), producing NCHW directly.

    Lane padding is sliced off BEFORE any interpolation work (never upsample
    the zero classes); each separable pass is one big lane-dense MXU matmul
    (batch folded into the matmul N / M dims); the W pass writes the final
    (n, c, out_h, out_w) layout, so there is no trailing HBM transpose."""
    L = logits_flat.reshape(n, hb, wb, -1)[..., :num_classes]       # (n,hb,wb,C) bf16
    a_h = jnp.asarray(_interp_matrix(out_h, hb), COMPUTE_DTYPE)     # (out_h, hb)
    a_wT = jnp.asarray(_interp_matrix(out_w, wb).T, COMPUTE_DTYPE)  # (wb, out_w)

    # H pass: (out_h, hb) @ (hb, n*C*wb) -- single dot, not per-plane loops.
    xr = jnp.transpose(L, (1, 0, 3, 2)).reshape(hb, n * num_classes * wb)
    th = pallas_matmul(a_h, xr, COMPUTE_DTYPE)                      # (out_h, n*C*wb)

    # W pass: (n*C*out_h, wb) @ (wb, out_w) -> rows already in NCHW order.
    t1 = jnp.transpose(th.reshape(out_h, n, num_classes, wb),
                       (1, 2, 0, 3)).reshape(n * num_classes * out_h, wb)
    mm = n * num_classes * out_h
    tm = 512 if mm % 512 == 0 else (256 if mm % 256 == 0 else None)
    out = pallas_matmul(t1, a_wT, jnp.float32, tm=tm)               # (n*C*out_h, out_w)
    return out.reshape(n, num_classes, out_h, out_w)


# ------------------------------ parameters ---------------------------------

def init_params(key):
    k0, k1, k2, k3 = jax.random.split(key, 4)

    def kaiming_fan_out(k, shape, fan_out):
        # nn.init.kaiming_normal_(mode='fan_out', nonlinearity='relu')
        std = (2.0 / fan_out) ** 0.5
        return std * jax.random.normal(k, shape, jnp.float32)

    w_cls = kaiming_fan_out(k3, (OUTDIM, NUM_CLASSES), NUM_CLASSES)
    # lane-dense cls output: pad class dim to 128 with zero weights/bias,
    # sliced off in the wrapper before the upsample.
    w_cls_pad = jnp.zeros((OUTDIM, CPAD), jnp.float32).at[:, :NUM_CLASSES].set(w_cls)

    return {
        # TODO(synk): real backbone comes from build_backbone(cfg.MODEL_BACKBONE)
        # (external); substituted by a deterministic strided 1x1-projection stub.
        "w_backbone": kaiming_fan_out(k0, (CIN, OUTPUT_DIM), OUTPUT_DIM),
        "b_backbone": jnp.zeros((OUTPUT_DIM,), jnp.float32),
        # conv_fov: Conv2d(OUTPUT_DIM, outdim, 3, padding=12, dilation=12),
        # stored tap-major as (9*cin, outdim) to match the im2col slab layout.
        "w_fov": kaiming_fan_out(k1, (9 * OUTPUT_DIM, OUTDIM),
                                 OUTDIM * 9).astype(COMPUTE_DTYPE),
        "b_fov": jnp.zeros((1, OUTDIM), jnp.float32),
        # conv_fov2: Conv2d(outdim, outdim, 1)
        "w_fov2": kaiming_fan_out(k2, (OUTDIM, OUTDIM),
                                  OUTDIM).astype(COMPUTE_DTYPE),
        "b_fov2": jnp.zeros((1, OUTDIM), jnp.float32),
        # cls_conv: Conv2d(outdim, num_classes, 1), lane-padded to CPAD
        "w_cls": w_cls_pad.astype(COMPUTE_DTYPE),
        "b_cls": jnp.zeros((1, CPAD), jnp.float32),
    }


# -------------------------------- forward ----------------------------------

@jax.jit
def deeplabv1_caffe_forward(params, x_nchw):
    n, c, h, w = x_nchw.shape
    x = jnp.transpose(x_nchw, (0, 2, 3, 1)).astype(jnp.float32)        # -> NHWC

    # ---- backbone stub: strided subsample + 1x1 projection + ReLU ----
    # Left to XLA on purpose: K=CIN=4 is MXU-degenerate.
    xb = x[:, ::OUTPUT_STRIDE, ::OUTPUT_STRIDE, :]
    hb, wb = xb.shape[1], xb.shape[2]
    xb = jax.nn.relu(jnp.einsum("nhwc,cd->nhwd", xb, params["w_backbone"])
                     + params["b_backbone"])

    # ---- MaxPool2d(3, 1, 1): Pallas, channel-tiled, bf16 out ----
    pooled = maxpool3x3_s1_p1(xb, COMPUTE_DTYPE)                       # (n,hb,wb,Cb)

    # ---- im2col slab for the dilated 3x3 conv (pad + 9 static taps, XLA) ----
    # TODO(synk): at real scale (OUTPUT_DIM=1024, H,W~65) this 9x slab should be
    # built in-kernel from a spatially tiled halo block to avoid 9x HBM traffic.
    d = DILATION
    xp = jnp.pad(pooled, ((0, 0), (d, d), (d, d), (0, 0)))
    taps = [xp[:, kh * d:kh * d + hb, kw * d:kw * d + wb, :]
            for kh in range(3) for kw in range(3)]
    slab = jnp.concatenate(taps, axis=-1).reshape(n * hb * wb, 9 * OUTPUT_DIM)

    # ---- conv_fov+ReLU -> conv_fov2+ReLU -> cls_conv: one fused Pallas call ----
    # (dropout1 / dropout2 are identities in eval mode)
    logits = fused_head(slab, params["w_fov"], params["b_fov"],
                        params["w_fov2"], params["b_fov2"],
                        params["w_cls"], params["b_cls"])              # (m, CPAD) bf16

    # ---- bilinear upsample (align_corners=True), output already NCHW ----
    return bilinear_upsample_nchw(logits, n, hb, wb, NUM_CLASSES, h, w)


if __name__ == "__main__":
    key = jax.random.PRNGKey(0)
    pkey, xkey = jax.random.split(key)
    params = init_params(pkey)
    x = jax.random.normal(xkey, (2, CIN, 64, 64), jnp.float32)          # NCHW input
    y = deeplabv1_caffe_forward(params, x)
    jax.block_until_ready(y)
    assert y.shape == (2, NUM_CLASSES, 64, 64), y.shape
    print("KERNEL_OK")
</pallas_src>

<mosaic_0001>
module attributes {stable_mosaic.version = 11 : i64} {
  func.func @_maxpool3x3_kernel(%arg0: i32, %arg1: memref<2x10x10x32xf32, #tpu.memory_space<vmem>>, %arg2: memref<2x8x8x32xbf16, #tpu.memory_space<vmem>>) attributes {dimension_semantics = [#tpu.dimension_semantics<parallel>], iteration_bounds = array<i64: 1>, scalar_prefetch = 0 : i64, scratch_operands = 0 : i64, tpu.core_type = #tpu.core_type<tc>, window_params = [{transform_indices = @transform_0, window_bounds = array<i64: 2, 10, 10, 32>}, {transform_indices = @transform_1, window_bounds = array<i64: 2, 8, 8, 32>}]} {
    %c0 = arith.constant 0 : index
    %c0_0 = arith.constant 0 : index
    %c0_1 = arith.constant 0 : index
    %c0_2 = arith.constant 0 : index
    %0 = vector.load %arg1[%c0, %c0_0, %c0_1, %c0_2] : memref<2x10x10x32xf32, #tpu.memory_space<vmem>>, vector<2x10x8x32xf32>
    %c0_3 = arith.constant 0 : index
    %c0_4 = arith.constant 0 : index
    %c1 = arith.constant 1 : index
    %c0_5 = arith.constant 0 : index
    %1 = vector.load %arg1[%c0_3, %c0_4, %c1, %c0_5] : memref<2x10x10x32xf32, #tpu.memory_space<vmem>>, vector<2x10x8x32xf32>
    %2 = arith.maximumf %0, %1 : vector<2x10x8x32xf32>
    %c0_6 = arith.constant 0 : index
    %c0_7 = arith.constant 0 : index
    %c2 = arith.constant 2 : index
    %c0_8 = arith.constant 0 : index
    %3 = vector.load %arg1[%c0_6, %c0_7, %c2, %c0_8] : memref<2x10x10x32xf32, #tpu.memory_space<vmem>>, vector<2x10x8x32xf32>
    %4 = arith.maximumf %2, %3 : vector<2x10x8x32xf32>
    %5 = vector.extract_strided_slice %4 {offsets = [0, 0, 0, 0], sizes = [2, 8, 8, 32], strides = [1, 1, 1, 1]} : vector<2x10x8x32xf32> to vector<2x8x8x32xf32>
    %6 = vector.extract_strided_slice %4 {offsets = [0, 1, 0, 0], sizes = [2, 8, 8, 32], strides = [1, 1, 1, 1]} : vector<2x10x8x32xf32> to vector<2x8x8x32xf32>
    %7 = arith.maximumf %5, %6 : vector<2x8x8x32xf32>
    %8 = vector.extract_strided_slice %4 {offsets = [0, 2, 0, 0], sizes = [2, 8, 8, 32], strides = [1, 1, 1, 1]} : vector<2x10x8x32xf32> to vector<2x8x8x32xf32>
    %9 = arith.maximumf %7, %8 : vector<2x8x8x32xf32>
    %10 = arith.truncf %9 : vector<2x8x8x32xf32> to vector<2x8x8x32xbf16>
    %c0_9 = arith.constant 0 : index
    %c0_10 = arith.constant 0 : index
    %c0_11 = arith.constant 0 : index
    %c0_12 = arith.constant 0 : index
    %11 = vector.load %arg2[%c0_9, %c0_10, %c0_11, %c0_12] : memref<2x8x8x32xbf16, #tpu.memory_space<vmem>>, vector<2x8x8x32xbf16>
    tpu.vector_store %arg2[%c0_9, %c0_10, %c0_11, %c0_12], %10 {strides = array<i32>} : memref<2x8x8x32xbf16, #tpu.memory_space<vmem>>, vector<2x8x8x32xbf16>,
    return
  }
  func.func @transform_0(%arg0: i32) -> (i32, i32, i32, i32) {
    %c0_i32 = arith.constant 0 : i32
    %c0_i32_0 = arith.constant 0 : i32
    %c0_i32_1 = arith.constant 0 : i32
    %c0_i32_2 = arith.constant 0 : i32
    return %c0_i32, %c0_i32_0, %c0_i32_1, %arg0 : i32, i32, i32, i32
  }
  func.func @transform_1(%arg0: i32) -> (i32, i32, i32, i32) {
    %c0_i32 = arith.constant 0 : i32
    %c0_i32_0 = arith.constant 0 : i32
    %c0_i32_1 = arith.constant 0 : i32
    %c0_i32_2 = arith.constant 0 : i32
    return %c0_i32, %c0_i32_0, %c0_i32_1, %arg0 : i32, i32, i32, i32
  }
}

module attributes {stable_mosaic.version = 11 : i64} {
  func.func @_fused_head_kernel(%arg0: i32, %arg1: memref<128x288xbf16, #tpu.memory_space<vmem>>, %arg2: memref<288x256xbf16, #tpu.memory_space<vmem>>, %arg3: memref<1x256xf32, #tpu.memory_space<vmem>>, %arg4: memref<256x256xbf16, #tpu.memory_space<vmem>>, %arg5: memref<1x256xf32, #tpu.memory_space<vmem>>, %arg6: memref<256x128xbf16, #tpu.memory_space<vmem>>, %arg7: memref<1x128xf32, #tpu.memory_space<vmem>>, %arg8: memref<128x128xbf16, #tpu.memory_space<vmem>>, %arg9: memref<128x256xf32, #tpu.memory_space<vmem>>) attributes {dimension_semantics = [#tpu.dimension_semantics<arbitrary>], iteration_bounds = array<i64: 1>, scalar_prefetch = 0 : i64, scratch_operands = 1 : i64, tpu.core_type = #tpu.core_type<tc>, window_params = [{pipeline_mode = #tpu.pipeline_mode<synchronous>, transform_indices = @transform_0, window_bounds = array<i64: 128, 288>}, {transform_indices = @transform_1, window_bounds = array<i64: 288, 256>}, {transform_indices = @transform_2, window_bounds = array<i64: 1, 256>}, {transform_indices = @transform_3, window_bounds = array<i64: 256, 256>}, {pipeline_mode = #tpu.pipeline_mode<synchronous>, transform_indices = @transform_4, window_bounds = array<i64: 1, 256>}, {pipeline_mode = #tpu.pipeline_mode<synchronous>, transform_indices = @transform_5, window_bounds = array<i64: 256, 128>}, {pipeline_mode = #tpu.pipeline_mode<synchronous>, transform_indices = @transform_6, window_bounds = array<i64: 1, 128>}, {pipeline_mode = #tpu.pipeline_mode<synchronous>, transform_indices = @transform_7, window_bounds = array<i64: 128, 128>}]} {
    %c0_i32 = arith.constant 0 : i32
    %0 = arith.cmpi eq, %arg0, %c0_i32 : i32
    %1 = arith.extui %0 : i1 to i32
    %c0_i32_0 = arith.constant 0 : i32
    %2 = arith.cmpi ne, %1, %c0_i32_0 : i32
    scf.if %2 {
      %cst_16 = arith.constant 0.000000e+00 : f32
      %20 = vector.broadcast %cst_16 : f32 to vector<128x256xf32>
      %c0_17 = arith.constant 0 : index
      %c0_18 = arith.constant 0 : index
      %21 = vector.load %arg9[%c0_17, %c0_18] : memref<128x256xf32, #tpu.memory_space<vmem>>, vector<128x256xf32>
      tpu.vector_store %arg9[%c0_17, %c0_18], %20 {strides = array<i32>} : memref<128x256xf32, #tpu.memory_space<vmem>>, vector<128x256xf32>,
    } else {
    }
    %c0 = arith.constant 0 : index
    %c0_1 = arith.constant 0 : index
    %3 = vector.load %arg1[%c0, %c0_1] : memref<128x288xbf16, #tpu.memory_space<vmem>>, vector<128x288xbf16>
    %c0_2 = arith.constant 0 : index
    %c0_3 = arith.constant 0 : index
    %4 = vector.load %arg2[%c0_2, %c0_3] : memref<288x256xbf16, #tpu.memory_space<vmem>>, vector<288x256xbf16>
    %cst = arith.constant dense<0.000000e+00> : vector<128x256xf32>
    %5 = tpu.matmul %3, %4, %cst {dimension_numbers = #tpu.dot_dimension_numbers<[1], [0], [0], [1], [0, 0, 1, 1], [], []>} : vector<128x288xbf16>, vector<288x256xbf16>, vector<128x256xf32> -> vector<128x256xf32>
    %c0_4 = arith.constant 0 : index
    %c0_5 = arith.constant 0 : index
    %6 = vector.load %arg3[%c0_4, %c0_5] : memref<1x256xf32, #tpu.memory_space<vmem>>, vector<1x256xf32>
    %7 = vector.broadcast %6 : vector<1x256xf32> to vector<128x256xf32>
    %8 = arith.addf %5, %7 : vector<128x256xf32>
    %cst_6 = arith.constant 0.000000e+00 : f32
    %9 = vector.broadcast %cst_6 : f32 to vector<128x256xf32>
    %10 = arith.maximumf %8, %9 : vector<128x256xf32>
    %11 = arith.truncf %10 : vector<128x256xf32> to vector<128x256xbf16>
    %c0_7 = arith.constant 0 : index
    %c0_8 = arith.constant 0 : index
    %12 = vector.load %arg9[%c0_7, %c0_8] : memref<128x256xf32, #tpu.memory_space<vmem>>, vector<128x256xf32>
    %c0_9 = arith.constant 0 : index
    %c0_10 = arith.constant 0 : index
    %13 = vector.load %arg4[%c0_9, %c0_10] : memref<256x256xbf16, #tpu.memory_space<vmem>>, vector<256x256xbf16>
    %cst_11 = arith.constant dense<0.000000e+00> : vector<128x256xf32>
    %14 = tpu.matmul %11, %13, %cst_11 {dimension_numbers = #tpu.dot_dimension_numbers<[1], [0], [0], [1], [0, 0, 1, 1], [], []>} : vector<128x256xbf16>, vector<256x256xbf16>, vector<128x256xf32> -> vector<128x256xf32>
    %15 = arith.addf %12, %14 : vector<128x256xf32>
    %c0_12 = arith.constant 0 : index
    %c0_13 = arith.constant 0 : index
    %16 = vector.load %arg9[%c0_12, %c0_13] : memref<128x256xf32, #tpu.memory_space<vmem>>, vector<128x256xf32>
    tpu.vector_store %arg9[%c0_12, %c0_13], %15 {strides = array<i32>} : memref<128x256xf32, #tpu.memory_space<vmem>>, vector<128x256xf32>,
    %c0_i32_14 = arith.constant 0 : i32
    %17 = arith.cmpi eq, %arg0, %c0_i32_14 : i32
    %18 = arith.extui %17 : i1 to i32
    %c0_i32_15 = arith.constant 0 : i32
    %19 = arith.cmpi ne, %18, %c0_i32_15 : i32
    scf.if %19 {
      %c0_16 = arith.constant 0 : index
      %c0_17 = arith.constant 0 : index
      %20 = vector.load %arg9[%c0_16, %c0_17] : memref<128x256xf32, #tpu.memory_space<vmem>>, vector<128x256xf32>
      %c0_18 = arith.constant 0 : index
      %c0_19 = arith.constant 0 : index
      %21 = vector.load %arg5[%c0_18, %c0_19] : memref<1x256xf32, #tpu.memory_space<vmem>>, vector<1x256xf32>
      %22 = vector.broadcast %21 : vector<1x256xf32> to vector<128x256xf32>
      %23 = arith.addf %20, %22 : vector<128x256xf32>
      %cst_20 = arith.constant 0.000000e+00 : f32
      %24 = vector.broadcast %cst_20 : f32 to vector<128x256xf32>
      %25 = arith.maximumf %23, %24 : vector<128x256xf32>
      %26 = arith.truncf %25 : vector<128x256xf32> to vector<128x256xbf16>
      %c0_21 = arith.constant 0 : index
      %c0_22 = arith.constant 0 : index
      %27 = vector.load %arg6[%c0_21, %c0_22] : memref<256x128xbf16, #tpu.memory_space<vmem>>, vector<256x128xbf16>
      %cst_23 = arith.constant dense<0.000000e+00> : vector<128x128xf32>
      %28 = tpu.matmul %26, %27, %cst_23 {dimension_numbers = #tpu.dot_dimension_numbers<[1], [0], [0], [1], [0, 0, 1, 1], [], []>} : vector<128x256xbf16>, vector<256x128xbf16>, vector<128x128xf32> -> vector<128x128xf32>
      %c0_24 = arith.constant 0 : index
      %c0_25 = arith.constant 0 : index
      %29 = vector.load %arg7[%c0_24, %c0_25] : memref<1x128xf32, #tpu.memory_space<vmem>>, vector<1x128xf32>
      %30 = vector.broadcast %29 : vector<1x128xf32> to vector<128x128xf32>
      %31 = arith.addf %28, %30 : vector<128x128xf32>
      %32 = arith.truncf %31 : vector<128x128xf32> to vector<128x128xbf16>
      %c0_26 = arith.constant 0 : index
      %c0_27 = arith.constant 0 : index
      %33 = vector.load %arg8[%c0_26, %c0_27] : memref<128x128xbf16, #tpu.memory_space<vmem>>, vector<128x128xbf16>
      tpu.vector_store %arg8[%c0_26, %c0_27], %32 {strides = array<i32>} : memref<128x128xbf16, #tpu.memory_space<vmem>>, vector<128x128xbf16>,
    } else {
    }
    return
  }
  func.func @transform_0(%arg0: i32) -> (i32, i32) {
    %c0_i32 = arith.constant 0 : i32
    %c0_i32_0 = arith.constant 0 : i32
    %c0_i32_1 = arith.constant 0 : i32
    return %c0_i32, %c0_i32_0 : i32, i32
  }
  func.func @transform_1(%arg0: i32) -> (i32, i32) {
    %c0_i32 = arith.constant 0 : i32
    %c0_i32_0 = arith.constant 0 : i32
    return %c0_i32, %arg0 : i32, i32
  }
  func.func @transform_2(%arg0: i32) -> (i32, i32) {
    %c0_i32 = arith.constant 0 : i32
    %c0_i32_0 = arith.constant 0 : i32
    return %c0_i32, %arg0 : i32, i32
  }
  func.func @transform_3(%arg0: i32) -> (i32, i32) {
    %c0_i32 = arith.constant 0 : i32
    %c0_i32_0 = arith.constant 0 : i32
    return %arg0, %c0_i32 : i32, i32
  }
  func.func @transform_4(%arg0: i32) -> (i32, i32) {
    %c0_i32 = arith.constant 0 : i32
    %c0_i32_0 = arith.constant 0 : i32
    %c0_i32_1 = arith.constant 0 : i32
    return %c0_i32, %c0_i32_0 : i32, i32
  }
  func.func @transform_5(%arg0: i32) -> (i32, i32) {
    %c0_i32 = arith.constant 0 : i32
    %c0_i32_0 = arith.constant 0 : i32
    %c0_i32_1 = arith.constant 0 : i32
    return %c0_i32, %c0_i32_0 : i32, i32
  }
  func.func @transform_6(%arg0: i32) -> (i32, i32) {
    %c0_i32 = arith.constant 0 : i32
    %c0_i32_0 = arith.constant 0 : i32
    %c0_i32_1 = arith.constant 0 : i32
    return %c0_i32, %c0_i32_0 : i32, i32
  }
  func.func @transform_7(%arg0: i32) -> (i32, i32) {
    %c0_i32 = arith.constant 0 : i32
    %c0_i32_0 = arith.constant 0 : i32
    %c0_i32_1 = arith.constant 0 : i32
    return %c0_i32, %c0_i32_0 : i32, i32
  }
}

module attributes {stable_mosaic.version = 11 : i64} {
  func.func @_matmul_kernel(%arg0: i32, %arg1: memref<64x8xbf16, #tpu.memory_space<vmem>>, %arg2: memref<8x128xbf16, #tpu.memory_space<vmem>>, %arg3: memref<64x128xbf16, #tpu.memory_space<vmem>>) attributes {dimension_semantics = [#tpu.dimension_semantics<parallel>], iteration_bounds = array<i64: 1>, scalar_prefetch = 0 : i64, scratch_operands = 0 : i64, tpu.core_type = #tpu.core_type<tc>, window_params = [{transform_indices = @transform_0, window_bounds = array<i64: 64, 8>}, {pipeline_mode = #tpu.pipeline_mode<synchronous>, transform_indices = @transform_1, window_bounds = array<i64: 8, 128>}, {transform_indices = @transform_2, window_bounds = array<i64: 64, 128>}]} {
    %c0 = arith.constant 0 : index
    %c0_0 = arith.constant 0 : index
    %0 = vector.load %arg1[%c0, %c0_0] : memref<64x8xbf16, #tpu.memory_space<vmem>>, vector<64x8xbf16>
    %c0_1 = arith.constant 0 : index
    %c0_2 = arith.constant 0 : index
    %1 = vector.load %arg2[%c0_1, %c0_2] : memref<8x128xbf16, #tpu.memory_space<vmem>>, vector<8x128xbf16>
    %cst = arith.constant dense<0.000000e+00> : vector<64x128xf32>
    %2 = tpu.matmul %0, %1, %cst {dimension_numbers = #tpu.dot_dimension_numbers<[1], [0], [0], [1], [0, 0, 1, 1], [], []>} : vector<64x8xbf16>, vector<8x128xbf16>, vector<64x128xf32> -> vector<64x128xf32>
    %3 = arith.truncf %2 : vector<64x128xf32> to vector<64x128xbf16>
    %c0_3 = arith.constant 0 : index
    %c0_4 = arith.constant 0 : index
    %4 = vector.load %arg3[%c0_3, %c0_4] : memref<64x128xbf16, #tpu.memory_space<vmem>>, vector<64x128xbf16>
    tpu.vector_store %arg3[%c0_3, %c0_4], %3 {strides = array<i32>} : memref<64x128xbf16, #tpu.memory_space<vmem>>, vector<64x128xbf16>,
    return
  }
  func.func @transform_0(%arg0: i32) -> (i32, i32) {
    %c0_i32 = arith.constant 0 : i32
    %c0_i32_0 = arith.constant 0 : i32
    return %arg0, %c0_i32 : i32, i32
  }
  func.func @transform_1(%arg0: i32) -> (i32, i32) {
    %c0_i32 = arith.constant 0 : i32
    %c0_i32_0 = arith.constant 0 : i32
    %c0_i32_1 = arith.constant 0 : i32
    return %c0_i32, %c0_i32_0 : i32, i32
  }
  func.func @transform_2(%arg0: i32) -> (i32, i32) {
    %c0_i32 = arith.constant 0 : i32
    %c0_i32_0 = arith.constant 0 : i32
    return %arg0, %c0_i32 : i32, i32
  }
}

module attributes {stable_mosaic.version = 11 : i64} {
  func.func @_matmul_kernel(%arg0: i32, %arg1: memref<512x8xbf16, #tpu.memory_space<vmem>>, %arg2: memref<8x64xbf16, #tpu.memory_space<vmem>>, %arg3: memref<512x64xf32, #tpu.memory_space<vmem>>) attributes {dimension_semantics = [#tpu.dimension_semantics<parallel>], iteration_bounds = array<i64: 2>, scalar_prefetch = 0 : i64, scratch_operands = 0 : i64, tpu.core_type = #tpu.core_type<tc>, window_params = [{transform_indices = @transform_0, window_bounds = array<i64: 512, 8>}, {pipeline_mode = #tpu.pipeline_mode<synchronous>, transform_indices = @transform_1, window_bounds = array<i64: 8, 64>}, {transform_indices = @transform_2, window_bounds = array<i64: 512, 64>}]} {
    %c0 = arith.constant 0 : index
    %c0_0 = arith.constant 0 : index
    %0 = vector.load %arg1[%c0, %c0_0] : memref<512x8xbf16, #tpu.memory_space<vmem>>, vector<512x8xbf16>
    %c0_1 = arith.constant 0 : index
    %c0_2 = arith.constant 0 : index
    %1 = vector.load %arg2[%c0_1, %c0_2] : memref<8x64xbf16, #tpu.memory_space<vmem>>, vector<8x64xbf16>
    %cst = arith.constant dense<0.000000e+00> : vector<512x64xf32>
    %2 = tpu.matmul %0, %1, %cst {dimension_numbers = #tpu.dot_dimension_numbers<[1], [0], [0], [1], [0, 0, 1, 1], [], []>} : vector<512x8xbf16>, vector<8x64xbf16>, vector<512x64xf32> -> vector<512x64xf32>
    %c0_3 = arith.constant 0 : index
    %c0_4 = arith.constant 0 : index
    %3 = vector.load %arg3[%c0_3, %c0_4] : memref<512x64xf32, #tpu.memory_space<vmem>>, vector<512x64xf32>
    tpu.vector_store %arg3[%c0_3, %c0_4], %2 {strides = array<i32>} : memref<512x64xf32, #tpu.memory_space<vmem>>, vector<512x64xf32>,
    return
  }
  func.func @transform_0(%arg0: i32) -> (i32, i32) {
    %c0_i32 = arith.constant 0 : i32
    %c0_i32_0 = arith.constant 0 : i32
    return %arg0, %c0_i32 : i32, i32
  }
  func.func @transform_1(%arg0: i32) -> (i32, i32) {
    %c0_i32 = arith.constant 0 : i32
    %c0_i32_0 = arith.constant 0 : i32
    %c0_i32_1 = arith.constant 0 : i32
    return %c0_i32, %c0_i32_0 : i32, i32
  }
  func.func @transform_2(%arg0: i32) -> (i32, i32) {
    %c0_i32 = arith.constant 0 : i32
    %c0_i32_0 = arith.constant 0 : i32
    return %arg0, %c0_i32 : i32, i32
  }
}

</mosaic_0001>

<bundles_post_ra>
// kernel: deeplabv1_caffe_forward.4
= control target key start
LH: loop header
LB: loop body
LE: loop exit
PB: predicated region body
PF: predicated region fallthrough
CT: control target
= control target key end

     0   :  { %vm156_vm0 = vcmask 257024   ;;  %s431_s0 = inlined_call_operand.vmem [shape: f32[2,10,10,32], index: 0, kind: input, shape index: {}]   ;;  %s432_s1 = inlined_call_operand.vmem [shape: bf16[2,8,8,32], index: 1, kind: output, shape index: {}]  }
   0x1   :  { %v8_v0 = vld [vmem:[%s431_s0] sm:$0xff]  ;;  %v9_v1 = vld [vmem:[%s431_s0 + $0x10] sm:$0xff] }
   0x2   :  { %v10_v2 = vld [vmem:[%s431_s0 + $0x20] sm:$0xff]  ;;  %v29_v4 = vld [vmem:[%s431_s0 + $0x11] sm:$0xff] }
   0x3   :  { %v28_v3 = vld [vmem:[%s431_s0 + $0x1] sm:$0xff]  ;;  %v49_v7 = vmax.f32 %v9_v1, %v29_v4  ;;  %v69_v10 = vld [vmem:[%s431_s0 + $0x12] sm:$0xff] }
   0x4   :  { %v30_v5 = vld [vmem:[%s431_s0 + $0x21] sm:$0xff]  ;;  %v48_v6 = vmax.f32 %v8_v0, %v28_v3  ;;  %v11_v12 = vld [vmem:[%s431_s0 + $0x30] sm:$0xff] }
   0x5   :  { %v50_v8 = vmax.f32 %v10_v2, %v30_v5  ;;  %v68_v9 = vld [vmem:[%s431_s0 + $0x2] sm:$0xff]  ;;  %v31_v13 = vld [vmem:[%s431_s0 + $0x31] sm:$0xff]  ;;  %v89_v16 = vmax.f32 %v49_v7, %v69_v10 }
   0x6   :  { %v70_v11 = vld [vmem:[%s431_s0 + $0x22] sm:$0xff]  ;;  %v71_v14 = vld [vmem:[%s431_s0 + $0x32] sm:$0xff]  ;;  %v88_v15 = vmax.f32 %v48_v6, %v68_v9  ;;  %v51_v18 = vmax.f32 %v11_v12, %v31_v13 }
   0x7   :  { %v90_v17 = vmax.f32 %v50_v8, %v70_v11  ;;  %v12_v19 = vld [vmem:[%s431_s0 + $0x40] sm:$0xff]  ;;  %v13_v23 = vld [vmem:[%s431_s0 + $0x50] sm:$0xff] }
   0x8   :  { %v32_v20 = vld [vmem:[%s431_s0 + $0x41] sm:$0xff]  ;;  %v33_v24 = vld [vmem:[%s431_s0 + $0x51] sm:$0xff]  ;;  %v108_v26 = vmax.f32 %v88_v15, %v89_v16  ;;  %v91_v27 = vmax.f32 %v51_v18, %v71_v14 }
   0x9   :  { %v72_v21 = vld [vmem:[%s431_s0 + $0x42] sm:$0xff]  ;;  %v52_v22 = vmax.f32 %v12_v19, %v32_v20  ;;  %v73_v25 = vld [vmem:[%s431_s0 + $0x52] sm:$0xff]  ;;  %v109_v28 = vmax.f32 %v89_v16, %v90_v17  ;;  %v53_v29 = vmax.f32 %v13_v23, %v33_v24 }
   0xa   :  { %v14_v30 = vld [vmem:[%s431_s0 + $0x60] sm:$0xff]  ;;  %v15_v35 = vld [vmem:[%s431_s0 + $0x70] sm:$0xff]  ;;  %v124_v38 = vmax.f32 %v108_v26, %v90_v17  ;;  %v110_v40 = vmax.f32 %v90_v17, %v91_v27 }
   0xb   :  { %v34_v31 = vld [vmem:[%s431_s0 + $0x61] sm:$0xff]  ;;  %v92_v33 = vmax.f32 %v52_v22, %v72_v21  ;;  %v35_v36 = vld [vmem:[%s431_s0 + $0x71] sm:$0xff]  ;;  %v125_v39 = vmax.f32 %v109_v28, %v91_v27  ;;  %v93_v41 = vmax.f32 %v53_v29, %v73_v25 }
   0xc   :  { %v74_v32 = vld [vmem:[%s431_s0 + $0x62] sm:$0xff]  ;;  %v54_v34 = vmax.f32 %v14_v30, %v34_v31  ;;  %v75_v37 = vld [vmem:[%s431_s0 + $0x72] sm:$0xff]  ;;  %v55_v47 = vmax.f32 %v15_v35, %v35_v36  ;;  %v140_v52 = vpack.c.bf16 %v124_v38, %v124_v38 }
   0xd   :  { %v16_v42 = vld [vmem:[%s431_s0 + $0x80] sm:$0xff]  ;;  %v111_v45 = vmax.f32 %v91_v27, %v92_v33  ;;  %v17_v49 = vld [vmem:[%s431_s0 + $0x90] sm:$0xff]  ;;  %v141_v53 = vpack.c.bf16 %v125_v39, %v125_v39  ;;  %v126_v54 = vmax.f32 %v110_v40, %v92_v33  ;;  %v112_v55 = vmax.f32 %v92_v33, %v93_v41 }
   0xe   :  { %v36_v43 = vld [vmem:[%s431_s0 + $0x81] sm:$0xff]  ;;  %v94_v46 = vmax.f32 %v54_v34, %v74_v32  ;;  %v37_v50 = vld [vmem:[%s431_s0 + $0x91] sm:$0xff]  ;;  %v95_v60 = vmax.f32 %v55_v47, %v75_v37  ;;  %157 = vst.msk [vmem:[%s432_s1] sm:$0xf] %vm156_vm0, %v140_v52 }
   0xf   :  { %v76_v44 = vld [vmem:[%s431_s0 + $0x82] sm:$0xff]  ;;  %v56_v48 = vmax.f32 %v16_v42, %v36_v43  ;;  %v77_v51 = vld [vmem:[%s431_s0 + $0x92] sm:$0xff]  ;;  %v127_v59 = vmax.f32 %v111_v45, %v93_v41  ;;  %158 = vst.msk [vmem:[%s432_s1 + $0x4] sm:$0xf] %vm156_vm0, %v141_v53  ;;  %v142_v2 = vpack.c.bf16 %v126_v54, %v126_v54  ;;  %v57_v4 = vmax.f32 %v17_v49, %v37_v50 }
  0x10   :  { %v18_v56 = vld [vmem:[%s431_s0 + $0xa0] sm:$0xff]  ;;  %v19_v57 = vld [vmem:[%s431_s0 + $0xb0] sm:$0xff]  ;;  %v113_v61 = vmax.f32 %v93_v41, %v94_v46  ;;  %v128_v3 = vmax.f32 %v112_v55, %v94_v46  ;;  %v114_v11 = vmax.f32 %v94_v46, %v95_v60 }
  0x11   :  { %v20_v58 = vld [vmem:[%s431_s0 + $0xc0] sm:$0xff]  ;;  %v96_v62 = vmax.f32 %v56_v48, %v76_v44  ;;  %v39_v0 = vld [vmem:[%s431_s0 + $0xb1] sm:$0xff]  ;;  %v143_v9 = vpack.c.bf16 %v127_v59, %v127_v59  ;;  %159 = vst.msk [vmem:[%s432_s1 + $0x8] sm:$0xf] %vm156_vm0, %v142_v2  ;;  %v97_v17 = vmax.f32 %v57_v4, %v77_v51 }
  0x12   :  { %v38_v63 = vld [vmem:[%s431_s0 + $0xa1] sm:$0xff]  ;;  %v79_v7 = vld [vmem:[%s431_s0 + $0xb2] sm:$0xff]  ;;  %v129_v10 = vmax.f32 %v113_v61, %v95_v60  ;;  %v144_v16 = vpack.c.bf16 %v128_v3, %v128_v3  ;;  %v59_v18 = vmax.f32 %v19_v57, %v39_v0 }
  0x13   :  { %v40_v1 = vld [vmem:[%s431_s0 + $0xc1] sm:$0xff]  ;;  %v58_v5 = vmax.f32 %v18_v56, %v38_v63  ;;  %v115_v12 = vmax.f32 %v95_v60, %v96_v62  ;;  %v21_v13 = vld [vmem:[%s431_s0 + $0xd0] sm:$0xff]  ;;  %160 = vst.msk [vmem:[%s432_s1 + $0xc] sm:$0xf] %vm156_vm0, %v143_v9  ;;  %v130_v24 = vmax.f32 %v114_v11, %v96_v62 }
  0x14   :  { %v78_v6 = vld [vmem:[%s431_s0 + $0xa2] sm:$0xff]  ;;  %v41_v14 = vld [vmem:[%s431_s0 + $0xd1] sm:$0xff]  ;;  %v60_v19 = vmax.f32 %v20_v58, %v40_v1  ;;  %v145_v23 = vpack.c.bf16 %v129_v10, %v129_v10  ;;  %161 = vst.msk [vmem:[%s432_s1 + $0x10] sm:$0xf] %vm156_vm0, %v144_v16  ;;  %v99_v31 = vmax.f32 %v59_v18, %v79_v7 }
  0x15   :  { %v80_v8 = vld [vmem:[%s431_s0 + $0xc2] sm:$0xff]  ;;  %v81_v15 = vld [vmem:[%s431_s0 + $0xd2] sm:$0xff]  ;;  %v98_v25 = vmax.f32 %v58_v5, %v78_v6  ;;  %v61_v26 = vmax.f32 %v21_v13, %v41_v14  ;;  %v131_v30 = vmax.f32 %v115_v12, %v97_v17  ;;  %v146_v37 = vpack.c.bf16 %v130_v24, %v130_v24 }
  0x16   :  { %v22_v20 = vld [vmem:[%s431_s0 + $0xe0] sm:$0xff]  ;;  %v23_v27 = vld [vmem:[%s431_s0 + $0xf0] sm:$0xff]  ;;  %v100_v32 = vmax.f32 %v60_v19, %v80_v8  ;;  %162 = vst.msk [vmem:[%s432_s1 + $0x14] sm:$0xf] %vm156_vm0, %v145_v23 }
  0x17   :  { %v42_v21 = vld [vmem:[%s431_s0 + $0xe1] sm:$0xff]  ;;  %v43_v28 = vld [vmem:[%s431_s0 + $0xf1] sm:$0xff]  ;;  %v101_v38 = vmax.f32 %v61_v26, %v81_v15  ;;  %v147_v43 = vpack.c.bf16 %v131_v30, %v131_v30  ;;  %v116_v44 = vmax.f32 %v98_v25, %v99_v31  ;;  %163 = vst.msk [vmem:[%s432_s1 + $0x18] sm:$0xf] %vm156_vm0, %v146_v37 }
  0x18   :  { %v82_v22 = vld [vmem:[%s431_s0 + $0xe2] sm:$0xff]  ;;  %v83_v29 = vld [vmem:[%s431_s0 + $0xf2] sm:$0xff]  ;;  %v62_v33 = vmax.f32 %v22_v20, %v42_v21  ;;  %v63_v39 = vmax.f32 %v23_v27, %v43_v28  ;;  %v117_v45 = vmax.f32 %v99_v31, %v100_v32 }
  0x19   :  { %v24_v34 = vld [vmem:[%s431_s0 + $0x100] sm:$0xff]  ;;  %v25_v41 = vld [vmem:[%s431_s0 + $0x110] sm:$0xff]  ;;  %v118_v50 = vmax.f32 %v100_v32, %v101_v38  ;;  %164 = vst.msk [vmem:[%s432_s1 + $0x1c] sm:$0xf] %vm156_vm0, %v147_v43  ;;  %v132_v55 = vmax.f32 %v116_v44, %v100_v32 }
  0x1a   :  { %v44_v35 = vld [vmem:[%s431_s0 + $0x101] sm:$0xff]  ;;  %v45_v42 = vld [vmem:[%s431_s0 + $0x111] sm:$0xff]  ;;  %v102_v46 = vmax.f32 %v62_v33, %v82_v22  ;;  %v103_v51 = vmax.f32 %v63_v39, %v83_v29  ;;  %v133_v56 = vmax.f32 %v117_v45, %v101_v38 }
  0x1b   :  { %v84_v36 = vld [vmem:[%s431_s0 + $0x102] sm:$0xff]  ;;  %v64_v40 = vmax.f32 %v24_v34, %v44_v35  ;;  %v85_v47 = vld [vmem:[%s431_s0 + $0x112] sm:$0xff]  ;;  %v65_v53 = vmax.f32 %v25_v41, %v45_v42  ;;  %v148_v1 = vpack.c.bf16 %v132_v55, %v132_v55 }
  0x1c   :  { %v26_v48 = vld [vmem:[%s431_s0 + $0x120] sm:$0xff]  ;;  %v119_v57 = vmax.f32 %v101_v38, %v102_v46  ;;  %v134_v59 = vmax.f32 %v118_v50, %v102_v46  ;;  %v120_v60 = vmax.f32 %v102_v46, %v103_v51  ;;  %v27_v63 = vld [vmem:[%s431_s0 + $0x130] sm:$0xff]  ;;  %v149_v2 = vpack.c.bf16 %v133_v56, %v133_v56 }
  0x1d   :  { %v46_v49 = vld [vmem:[%s431_s0 + $0x121] sm:$0xff]  ;;  %v104_v52 = vmax.f32 %v64_v40, %v84_v36  ;;  %v105_v61 = vmax.f32 %v65_v53, %v85_v47  ;;  %v47_v0 = vld [vmem:[%s431_s0 + $0x131] sm:$0xff]  ;;  %165 = vst.msk [vmem:[%s432_s1 + $0x20] sm:$0xf] %vm156_vm0, %v148_v1 }
  0x1e   :  { %v86_v54 = vld [vmem:[%s431_s0 + $0x122] sm:$0xff]  ;;  %v66_v58 = vmax.f32 %v26_v48, %v46_v49  ;;  %v135_v3 = vmax.f32 %v119_v57, %v103_v51  ;;  %v150_v5 = vpack.c.bf16 %v134_v59, %v134_v59  ;;  %v87_v9 = vld [vmem:[%s431_s0 + $0x132] sm:$0xff]  ;;  %166 = vst.msk [vmem:[%s432_s1 + $0x24] sm:$0xf] %vm156_vm0, %v149_v2  ;;  %v67_v11 = vmax.f32 %v27_v63, %v47_v0 }
  0x1f   :  { %v121_v62 = vmax.f32 %v103_v51, %v104_v52  ;;  %v136_v6 = vmax.f32 %v120_v60, %v104_v52  ;;  %v122_v8 = vmax.f32 %v104_v52, %v105_v61 }
  0x20   :  { %v106_v4 = vmax.f32 %v66_v58, %v86_v54  ;;  %v151_v10 = vpack.c.bf16 %v135_v3, %v135_v3  ;;  %167 = vst.msk [vmem:[%s432_s1 + $0x28] sm:$0xf] %vm156_vm0, %v150_v5  ;;  %v107_v16 = vmax.f32 %v67_v11, %v87_v9 }
  0x21   :  { %v137_v7 = vmax.f32 %v121_v62, %v105_v61  ;;  %v152_v13 = vpack.c.bf16 %v136_v6, %v136_v6 }
  0x22   :  { %v123_v12 = vmax.f32 %v105_v61, %v106_v4  ;;  %v138_v15 = vmax.f32 %v122_v8, %v106_v4  ;;  %168 = vst.msk [vmem:[%s432_s1 + $0x2c] sm:$0xf] %vm156_vm0, %v151_v10 }
  0x23   :  { %v153_v14 = vpack.c.bf16 %v137_v7, %v137_v7  ;;  %169 = vst.msk [vmem:[%s432_s1 + $0x30] sm:$0xf] %vm156_vm0, %v152_v13 }
  0x24   :  { %v154_v17 = vpack.c.bf16 %v138_v15, %v138_v15  ;;  %v139_v18 = vmax.f32 %v123_v12, %v107_v16 }
  0x25   :  { %170 = vst.msk [vmem:[%s432_s1 + $0x34] sm:$0xf] %vm156_vm0, %v153_v14 }
  0x26   :  { %171 = vst.msk [vmem:[%s432_s1 + $0x38] sm:$0xf] %vm156_vm0, %v154_v17  ;;  %v155_v19 = vpack.c.bf16 %v139_v18, %v139_v18 }
  0x28   :  { %172 = vst.msk [vmem:[%s432_s1 + $0x3c] sm:$0xf] %vm156_vm0, %v155_v19 }

// kernel: deeplabv1_caffe_forward.6
= control target key start
LH: loop header
LB: loop body
LE: loop exit
PB: predicated region body
PF: predicated region fallthrough
CT: control target
= control target key end

     0   :  { %vm54_vm0 = vcmask 1043456   ;;  %vm41_vm1 = vcmask 64512   ;;  %s279_s1 = inlined_call_operand.vmem [shape: bf16[8,128], index: 1, kind: input, shape index: {}]   ;;  %s280_s0 = inlined_call_operand.vmem [shape: bf16[64,8], index: 0, kind: input, shape index: {}]   ;;  %s281_s2 = inlined_call_operand.vmem [shape: bf16[64,128], index: 2, kind: output, shape index: {}]  }
   0x1   :  { %v20_v0 = vld [vmem:[%s279_s1] sm:$0xf]  ;;  %v234_v3 = vld [vmem:[%s280_s0 + $0x10] sm:$0xff]   ;;  %v235_v4 = vld [vmem:[%s280_s0 + $0x8] sm:$0xff]  }
   0x2   :  { %231 = vmatprep.subr.msk.bf16.mxu0 %vm54_vm0, %v20_v0  ;;  %232 = vmatprep.subr.msk.bf16.mxu1 %vm54_vm0, %v20_v0  ;;  %v56_v1 = vsel %vm54_vm0, %v20_v0, 0  ;;  %v233_v2 = vld [vmem:[%s280_s0] sm:$0xff]   ;;  %v236_v5 = vld [vmem:[%s280_s0 + $0x18] sm:$0xff]  }
   0x3   :  { %220 = vmatpush3.bf16.msra.mxu0 %v56_v1  ;;  %230 = vmatpush3.bf16.msra.mxu1 %v56_v1 }
   0x4   :  { %221 = vmatprep.mubr.msk.bf16.mxu0 %vm41_vm1, %v233_v2  ;;  %225 = vmatprep.mubr.msk.bf16.mxu1 %vm41_vm1, %v234_v3 }
   0x6   :  { %222 = vmatmul.mubr.msk.bf16.vlgmr.msra.gmra.mxu0 %vm41_vm1, %v235_v4  ;;  %226 = vmatmul.mubr.msk.bf16.vlgmr.msra.gmra.mxu1 %vm41_vm1, %v236_v5 }
  0xc6   :  { %v223_v6 = vpop.f32.mrf.mxu0  ;;  %v227_v7 = vpop.f32.mrf.mxu1 }
  0xc8   :  { %v92_v8 = vpop.f32.mrf.mxu0  ;;  %v108_v9 = vpop.f32.mrf.mxu1 }
  0xca   :  { %v224_v10 = vpop.f32.mrf.mxu0  ;;  %v228_v12 = vpop.f32.mrf.mxu1 }
  0xcb   :  { %v199_v11 = vpack.c.bf16 %v224_v10, %v223_v6  ;;  %v209_v13 = vpack.c.bf16 %v228_v12, %v227_v7 }
  0xcc   :  { %v95_v14 = vpop.f32.mrf.mxu0  ;;  %v111_v16 = vpop.f32.mrf.mxu1 }
  0xcd   :  { %211 = vst [vmem:[%s281_s2 + $0x8] sm:$0xff] %v199_v11   ;;  %v194_v15 = vpack.c.bf16 %v95_v14, %v92_v8  ;;  %213 = vst [vmem:[%s281_s2 + $0x18] sm:$0xff] %v209_v13   ;;  %v204_v17 = vpack.c.bf16 %v111_v16, %v108_v9 }
  0xcf   :  { %195 = vst [vmem:[%s281_s2] sm:$0xff] %v194_v15   ;;  %212 = vst [vmem:[%s281_s2 + $0x10] sm:$0xff] %v204_v17  }

// kernel: deeplabv1_caffe_forward.5
= control target key start
LH: loop header
LB: loop body
LE: loop exit
PB: predicated region body
PF: predicated region fallthrough
CT: control target
= control target key end

     0   :  { %v2013_v1 = vmov 0   ;;  %vm443_vm0 = vcmask 261120   ;;  %s2607_s1 = inlined_call_operand.vmem [shape: bf16[288,256], index: 1, kind: input, shape index: {}]   ;;  %s2608_s0 = inlined_call_operand.vmem [shape: bf16[128,288], index: 0, kind: input, shape index: {}]   ;;  %s2609_s3 = inlined_call_operand.vmem [shape: bf16[256,256], index: 3, kind: input, shape index: {}]   ;;  %s2610_s5 = inlined_call_operand.vmem [shape: bf16[256,128], index: 5, kind: input, shape index: {}]   ;;  %s2611_s2 = inlined_call_operand.vmem [shape: f32[1,256], index: 2, kind: input, shape index: {}]   ;;  %s2612_s4 = inlined_call_operand.vmem [shape: f32[1,256], index: 4, kind: input, shape index: {}]   ;;  %s2613_s6 = inlined_call_operand.vmem [shape: f32[1,128], index: 6, kind: input, shape index: {}]   ;;  %s2614_s7 = inlined_call_operand.vmem [shape: bf16[128,128], index: 7, kind: output, shape index: {}]  }
   0x1   :  { %v1863_v0 = vld [vmem:[%s2607_s1 + $0x74] ss:$8 sps:$4 sm:$0xff]   ;;  %613 = vmatprep.mubr.bf16.mxu1 %v2013_v1  ;;  %v1865_v2 = vld [vmem:[%s2607_s1 + $0x70] ss:$8 sps:$4 sm:$0xff]   ;;  %v1866_v3 = vld [vmem:[%s2607_s1 + $0x64] ss:$8 sps:$4 sm:$0xff]  }
   0x2   :  { %468 = vmatprep.subr.bf16.mxu0 %v1863_v0  ;;  %v1868_v4 = vld [vmem:[%s2607_s1 + $0x60] ss:$8 sps:$4 sm:$0xff]   ;;  %v1869_v5 = vld [vmem:[%s2607_s1 + $0x54] ss:$8 sps:$4 sm:$0xff]   ;;  %v1871_v6 = vld [vmem:[%s2607_s1 + $0x50] ss:$8 sps:$4 sm:$0xff]  }
   0x3   :  { %469 = vmatpush1.bf16.msra.mxu0 %v1865_v2  ;;  %v1872_v7 = vld [vmem:[%s2607_s1 + $0x44] ss:$8 sps:$4 sm:$0xff]   ;;  %v1874_v8 = vld [vmem:[%s2607_s1 + $0x40] ss:$8 sps:$4 sm:$0xff]   ;;  %v1875_v9 = vld [vmem:[%s2607_s1 + $0x34] ss:$8 sps:$4 sm:$0xff]  }
   0x4   :  { %470 = vmatprep.subr.bf16.mxu0 %v1866_v3  ;;  %v1877_v10 = vld [vmem:[%s2607_s1 + $0x30] ss:$8 sps:$4 sm:$0xff]   ;;  %v1878_v11 = vld [vmem:[%s2607_s1 + $0x24] ss:$8 sps:$4 sm:$0xff]   ;;  %v1880_v12 = vld [vmem:[%s2607_s1 + $0x20] ss:$8 sps:$4 sm:$0xff]  }
   0x5   :  { %v1904_v13 = vld [vmem:[%s2607_s1 + $0x114] ss:$8 sps:$4 sm:$0xff]   ;;  %v1907_v14 = vld [vmem:[%s2607_s1 + $0x110] ss:$8 sps:$4 sm:$0xff]   ;;  %v1910_v16 = vld [vmem:[%s2607_s1 + $0x104] ss:$8 sps:$4 sm:$0xff]  }
   0x6   :  { %v1881_v15 = vld [vmem:[%s2607_s1 + $0x14] ss:$8 sps:$4 sm:$0xff]   ;;  %593 = vmatprep.subr.bf16.mxu1 %v1904_v13  ;;  %v1913_v17 = vld [vmem:[%s2607_s1 + $0x100] ss:$8 sps:$4 sm:$0xff]   ;;  %v1883_v18 = vld [vmem:[%s2607_s1 + $0x10] ss:$8 sps:$4 sm:$0xff]  }
   0x7   :  { %471 = vmatpush1.bf16.msra.mxu0 %v1868_v4  ;;  %594 = vmatpush1.bf16.msra.mxu1 %v1907_v14  ;;  %v1884_v19 = vld [vmem:[%s2607_s1 + $0x4] ss:$8 sps:$4 sm:$0xff]   ;;  %v1916_v20 = vld [vmem:[%s2608_s0 + $0x8] ss:$12 sps:$4 sm:$0xff]   ;;  %v1889_v24 = vld [vmem:[%s2607_s1 + $0xf0] ss:$8 sps:$4 sm:$0xff]  }
   0x8   :  { %472 = vmatprep.subr.bf16.mxu0 %v1869_v5  ;;  %595 = vmatprep.subr.bf16.mxu1 %v1910_v16  ;;  %v1920_v21 = vld [vmem:[%s2608_s0 + $0x4] ss:$12 sps:$4 sm:$0xff]   ;;  %v1886_v22 = vld [vmem:[%s2607_s1] ss:$8 sps:$4 sm:$0xff]   ;;  %v1887_v23 = vld [vmem:[%s2607_s1 + $0xf4] ss:$8 sps:$4 sm:$0xff]  }
   0x9   :  { %500 = vmatprep.mubr.bf16.mxu0 %v1920_v21  ;;  %v1890_v25 = vld [vmem:[%s2607_s1 + $0xe4] ss:$8 sps:$4 sm:$0xff]   ;;  %v1892_v27 = vld [vmem:[%s2607_s1 + $0xe0] ss:$8 sps:$4 sm:$0xff]   ;;  %v1893_v28 = vld [vmem:[%s2607_s1 + $0xd4] ss:$8 sps:$4 sm:$0xff]  }
   0xa   :  { %v1921_v26 = vld [vmem:[%s2608_s0 + $0x20] ss:$12 sps:$4 sm:$0xff]   ;;  %v1895_v29 = vld [vmem:[%s2607_s1 + $0xd0] ss:$8 sps:$4 sm:$0xff]   ;;  %v1951_v34 = vld [vmem:[%s2609_s3 + $0x74] ss:$8 sps:$4 sm:$0xff]  }
   0xb   :  { %473 = vmatpush1.bf16.msra.mxu0 %v1871_v6  ;;  %596 = vmatpush1.bf16.msra.mxu1 %v1913_v17  ;;  %v1896_v30 = vld [vmem:[%s2607_s1 + $0xc4] ss:$8 sps:$4 sm:$0xff]   ;;  %v1898_v32 = vld [vmem:[%s2607_s1 + $0xc0] ss:$8 sps:$4 sm:$0xff]   ;;  %v1949_v33 = vld [vmem:[%s2609_s3 + $0x70] ss:$8 sps:$4 sm:$0xff]  }
   0xc   :  { %474 = vmatprep.subr.bf16.mxu0 %v1872_v7  ;;  %v1925_v31 = vld [vmem:[%s2608_s0 + $0x38] ss:$12 sps:$4 sm:$0xff]   ;;  %v1899_v35 = vld [vmem:[%s2607_s1 + $0xb4] ss:$8 sps:$4 sm:$0xff]   ;;  %966 = vmatprep.subr.bf16.mxu1 %v1951_v34  ;;  %v1952_v37 = vld [vmem:[%s2609_s3 + $0x60] ss:$8 sps:$4 sm:$0xff]  }
   0xd   :  { %v1954_v36 = vld [vmem:[%s2609_s3 + $0x64] ss:$8 sps:$4 sm:$0xff]   ;;  %v1901_v38 = vld [vmem:[%s2607_s1 + $0xb0] ss:$8 sps:$4 sm:$0xff]   ;;  %v1957_v39 = vld [vmem:[%s2609_s3 + $0x54] ss:$8 sps:$4 sm:$0xff]  }
   0xe   :  { %1646 = vmatmul.mubr.msk.bf16.vlgmr.msra.gmra.mxu1 %vm443_vm0, %v1916_v20  ;;  %v1902_v40 = vld [vmem:[%s2607_s1 + $0xa4] ss:$8 sps:$4 sm:$0xff]   ;;  %v1929_v41 = vld [vmem:[%s2608_s0 + $0x50] ss:$12 sps:$4 sm:$0xff]   ;;  %v1906_v43 = vld [vmem:[%s2607_s1 + $0xa0] ss:$8 sps:$4 sm:$0xff]  }
   0xf   :  { %475 = vmatpush1.bf16.msra.mxu0 %v1874_v8  ;;  %623 = vmatprep.mubr.bf16.mxu1 %v2013_v1  ;;  %v1955_v42 = vld [vmem:[%s2609_s3 + $0x50] ss:$8 sps:$4 sm:$0xff]   ;;  %v1960_v44 = vld [vmem:[%s2609_s3 + $0x44] ss:$8 sps:$4 sm:$0xff]   ;;  %v1908_v45 = vld [vmem:[%s2607_s1 + $0x94] ss:$8 sps:$4 sm:$0xff]  }
  0x10   :  { %476 = vmatprep.subr.bf16.mxu0 %v1875_v9  ;;  %967 = vmatpush1.bf16.msra.mxu1 %v1949_v33  ;;  %v1958_v46 = vld [vmem:[%s2609_s3 + $0x40] ss:$8 sps:$4 sm:$0xff]   ;;  %v1912_v47 = vld [vmem:[%s2607_s1 + $0x90] ss:$8 sps:$4 sm:$0xff]   ;;  %v1963_v48 = vld [vmem:[%s2609_s3 + $0x34] ss:$8 sps:$4 sm:$0xff]  }
  0x11   :  { %968 = vmatprep.subr.bf16.mxu1 %v1954_v36  ;;  %v1914_v49 = vld [vmem:[%s2607_s1 + $0x84] ss:$8 sps:$4 sm:$0xff]   ;;  %v1917_v50 = vld [vmem:[%s2607_s1 + $0x80] ss:$8 sps:$4 sm:$0xff]   ;;  %v1961_v52 = vld [vmem:[%s2609_s3 + $0x30] ss:$8 sps:$4 sm:$0xff]  }
  0x12   :  { %v1933_v51 = vld [vmem:[%s2608_s0 + $0x68] ss:$12 sps:$4 sm:$0xff]   ;;  %v1966_v53 = vld [vmem:[%s2609_s3 + $0x24] ss:$8 sps:$4 sm:$0xff]   ;;  %v1967_v59 = vld [vmem:[%s2609_s3 + $0x10] ss:$8 sps:$4 sm:$0xff]  }
  0x13   :  { %477 = vmatpush1.bf16.msra.mxu0 %v1877_v10  ;;  %v1918_v54 = vld [vmem:[%s2608_s0] ss:$12 sps:$4 sm:$0xff]   ;;  %v1922_v56 = vld [vmem:[%s2608_s0 + $0x1c] ss:$12 sps:$4 sm:$0xff]   ;;  %v1924_v61 = vld [vmem:[%s2608_s0 + $0x18] ss:$12 sps:$4 sm:$0xff]  }
  0x14   :  { %478 = vmatprep.subr.bf16.mxu0 %v1878_v11  ;;  %969 = vmatpush1.bf16.msra.mxu1 %v1952_v37  ;;  %v1964_v55 = vld [vmem:[%s2609_s3 + $0x20] ss:$8 sps:$4 sm:$0xff]   ;;  %v1969_v57 = vld [vmem:[%s2609_s3 + $0x14] ss:$8 sps:$4 sm:$0xff]   ;;  %v1972_v60 = vld [vmem:[%s2609_s3 + $0x4] ss:$8 sps:$4 sm:$0xff]  }
  0x15   :  { %970 = vmatprep.subr.bf16.mxu1 %v1957_v39  ;;  %v1937_v58 = vld [vmem:[%s2608_s0 + $0x80] ss:$12 sps:$4 sm:$0xff]   ;;  %v1975_v0 = vld [vmem:[%s2609_s3 + $0xf4] ss:$8 sps:$4 sm:$0xff]   ;;  %v1941_v2 = vld [vmem:[%s2608_s0 + $0x98] ss:$12 sps:$4 sm:$0xff]  }
  0x16   :  { %1647 = vmatmul.mubr.msk.bf16.gmra.mxu1 %vm443_vm0, %v1921_v26  ;;  %v1970_v62 = vld [vmem:[%s2609_s3] ss:$8 sps:$4 sm:$0xff]   ;;  %v1973_v3 = vld [vmem:[%s2609_s3 + $0xf0] ss:$8 sps:$4 sm:$0xff]   ;;  %v1978_v4 = vld [vmem:[%s2609_s3 + $0xe4] ss:$8 sps:$4 sm:$0xff]  }
  0x17   :  { %479 = vmatpush1.bf16.msra.mxu0 %v1880_v12  ;;  %633 = vmatprep.mubr.bf16.mxu1 %v2013_v1  ;;  %v1926_v63 = vld [vmem:[%s2608_s0 + $0x34] ss:$12 sps:$4 sm:$0xff]   ;;  %v1928_v5 = vld [vmem:[%s2608_s0 + $0x30] ss:$12 sps:$4 sm:$0xff]   ;;  %v1930_v7 = vld [vmem:[%s2608_s0 + $0x4c] ss:$12 sps:$4 sm:$0xff]  }
  0x18   :  { %480 = vmatprep.subr.bf16.mxu0 %v1881_v15  ;;  %971 = vmatpush1.bf16.msra.mxu1 %v1955_v42  ;;  %v1976_v6 = vld [vmem:[%s2609_s3 + $0xe0] ss:$8 sps:$4 sm:$0xff]   ;;  %v1981_v8 = vld [vmem:[%s2609_s3 + $0xd4] ss:$8 sps:$4 sm:$0xff]   ;;  %v1984_v10 = vld [vmem:[%s2609_s3 + $0xc4] ss:$8 sps:$4 sm:$0xff]  }
  0x19   :  { %972 = vmatprep.subr.bf16.mxu1 %v1960_v44  ;;  %v1945_v9 = vld [vmem:[%s2608_s0 + $0xb0] ss:$12 sps:$4 sm:$0xff]   ;;  %v1932_v11 = vld [vmem:[%s2608_s0 + $0x48] ss:$12 sps:$4 sm:$0xff]   ;;  %v1936_v14 = vld [vmem:[%s2608_s0 + $0x60] ss:$12 sps:$4 sm:$0xff]  }
  0x1a   :  { %v1982_v12 = vld [vmem:[%s2609_s3 + $0xc0] ss:$8 sps:$4 sm:$0xff]   ;;  %v1934_v13 = vld [vmem:[%s2608_s0 + $0x64] ss:$12 sps:$4 sm:$0xff]   ;;  %v1987_v17 = vld [vmem:[%s2609_s3 + $0xb4] ss:$8 sps:$4 sm:$0xff]  }
  0x1b   :  { %481 = vmatpush1.bf16.msra.mxu0 %v1883_v18  ;;  %v1938_v15 = vld [vmem:[%s2608_s0 + $0x7c] ss:$12 sps:$4 sm:$0xff]   ;;  %v1985_v16 = vld [vmem:[%s2609_s3 + $0xb0] ss:$8 sps:$4 sm:$0xff]   ;;  %v2386_v36 = vld [vmem:[%s2610_s5 + $0x20] sm:$0xff]  }
  0x1c   :  { %482 = vmatprep.subr.bf16.mxu0 %v1884_v19  ;;  %973 = vmatpush1.bf16.msra.mxu1 %v1958_v46  ;;  %v1940_v18 = vld [vmem:[%s2608_s0 + $0x78] ss:$12 sps:$4 sm:$0xff]   ;;  %v1942_v19 = vld [vmem:[%s2608_s0 + $0x94] ss:$12 sps:$4 sm:$0xff]   ;;  %v1944_v20 = vld [vmem:[%s2608_s0 + $0x90] ss:$12 sps:$4 sm:$0xff]  }
  0x1d   :  { %974 = vmatprep.subr.bf16.mxu1 %v1963_v48  ;;  %v1946_v21 = vld [vmem:[%s2608_s0 + $0xac] ss:$12 sps:$4 sm:$0xff]  }
  0x1e   :  { %1648 = vmatmul.mubr.msk.bf16.gmra.mxu1 %vm443_vm0, %v1925_v31  ;;  %v1991_v26 = vld [vmem:[%s2609_s3 + $0x90] ss:$8 sps:$4 sm:$0xff]   ;;  %v2369_v33 = vld [vmem:[%s2610_s5 + $0x68] sm:$0xff]  }
  0x1f   :  { %483 = vmatpush1.bf16.msra.mxu0 %v1886_v22  ;;  %643 = vmatprep.mubr.bf16.mxu1 %v2013_v1  ;;  %v1948_v22 = vld [vmem:[%s2608_s0 + $0xa8] ss:$12 sps:$4 sm:$0xff]   ;;  %v2391_v37 = vld [vmem:[%s2610_s5 + $0x58] sm:$0xff]  }
  0x20   :  { %484 = vmatprep.subr.bf16.mxu0 %v1887_v23  ;;  %975 = vmatpush1.bf16.msra.mxu1 %v1961_v52  ;;  %v1990_v23 = vld [vmem:[%s2609_s3 + $0xa4] ss:$8 sps:$4 sm:$0xff]   ;;  %v2357_v31 = vld [vmem:[%s2610_s5 + $0x70] sm:$0xff]  }
  0x21   :  { %976 = vmatprep.subr.bf16.mxu1 %v1966_v53  ;;  %v2375_v34 = vld [vmem:[%s2610_s5 + $0x28] sm:$0xff]  }
  0x23   :  { %485 = vmatpush2.bf16.msra.mxu0 %v1889_v24  ;;  %v1988_v24 = vld [vmem:[%s2609_s3 + $0xa0] ss:$8 sps:$4 sm:$0xff]  }
  0x24   :  { %486 = vmatprep.subr.bf16.mxu0 %v1890_v25  ;;  %977 = vmatpush1.bf16.msra.mxu1 %v1964_v55  ;;  %v1993_v25 = vld [vmem:[%s2609_s3 + $0x94] ss:$8 sps:$4 sm:$0xff]  }
  0x25   :  { %978 = vmatprep.subr.bf16.mxu1 %v1969_v57 }
  0x26   :  { %1649 = vmatmul.mubr.msk.bf16.gmra.mxu1 %vm443_vm0, %v1929_v41 }
  0x27   :  { %487 = vmatpush2.bf16.msra.mxu0 %v1892_v27  ;;  %653 = vmatprep.mubr.bf16.mxu1 %v2013_v1  ;;  %v1996_v27 = vld [vmem:[%s2609_s3 + $0x84] ss:$8 sps:$4 sm:$0xff]  }
  0x28   :  { %488 = vmatprep.subr.bf16.mxu0 %v1893_v28  ;;  %979 = vmatpush1.bf16.msra.mxu1 %v1967_v59  ;;  %v1994_v28 = vld [vmem:[%s2609_s3 + $0x80] ss:$8 sps:$4 sm:$0xff]  }
  0x29   :  { %980 = vmatprep.subr.bf16.mxu1 %v1972_v60 }
  0x2b   :  { %489 = vmatpush2.bf16.msra.mxu0 %v1895_v29  ;;  %v1997_v29 = vld [vmem:[%s2610_s5 + $0x78] sm:$0xff]  }
  0x2c   :  { %490 = vmatprep.subr.bf16.mxu0 %v1896_v30  ;;  %981 = vmatpush1.bf16.msra.mxu1 %v1970_v62  ;;  %v2352_v30 = vld [vmem:[%s2610_s5 + $0x38] sm:$0xff]  }
  0x2d   :  { %982 = vmatprep.subr.bf16.mxu1 %v1975_v0 }
  0x2e   :  { %1650 = vmatmul.mubr.msk.bf16.gmra.mxu1 %vm443_vm0, %v1933_v51  ;;  %v133_v51 = vlaneseq }
  0x2f   :  { %491 = vmatpush2.bf16.msra.mxu0 %v1898_v32  ;;  %663 = vmatprep.mubr.bf16.mxu1 %v2013_v1  ;;  %v2363_v32 = vld [vmem:[%s2610_s5 + $0x30] sm:$0xff]  }
  0x30   :  { %492 = vmatprep.subr.bf16.mxu0 %v1899_v35  ;;  %983 = vmatpush2.bf16.msra.mxu1 %v1973_v3  ;;  %v2381_v35 = vld [vmem:[%s2610_s5 + $0x60] sm:$0xff]   ;;  %v2413_v53 = vshrl.u32 %v133_v51, 7 }
  0x31   :  { %984 = vmatprep.subr.bf16.mxu1 %v1978_v4 }
  0x32   :  { %v139_v55 = vsub.s32 1, %v2413_v53 }
  0x33   :  { %493 = vmatpush2.bf16.msra.mxu0 %v1901_v38  ;;  %v2399_v38 = vld [vmem:[%s2610_s5 + $0x18] sm:$0xff]  }
  0x34   :  { %494 = vmatprep.subr.bf16.mxu0 %v1902_v40  ;;  %985 = vmatpush2.bf16.msra.mxu1 %v1976_v6 }
  0x35   :  { %986 = vmatprep.subr.bf16.mxu1 %v1981_v8 }
  0x36   :  { %1651 = vmatmul.mubr.msk.bf16.gmra.mxu1 %vm443_vm0, %v1937_v58  ;;  %v131_v58 = vld [vmem:[%s2611_s2] sm:$0x3] }
  0x37   :  { %495 = vmatpush2.bf16.msra.mxu0 %v1906_v43  ;;  %673 = vmatprep.mubr.bf16.mxu1 %v2013_v1  ;;  %v2426_v59 = vrot.slane %v131_v58, %v139_v55 }
  0x38   :  { %496 = vmatprep.subr.bf16.mxu0 %v1908_v45 }
  0x3b   :  { %497 = vmatpush2.bf16.msra.mxu0 %v1912_v47 }
  0x3c   :  { %498 = vmatprep.subr.bf16.mxu0 %v1914_v49 }
  0x3e   :  { %1652 = vmatmul.mubr.msk.bf16.gmra.mxu1 %vm443_vm0, %v1941_v2 }
  0x3f   :  { %499 = vmatpush2.bf16.msra.mxu0 %v1917_v50  ;;  %683 = vmatprep.mubr.bf16.mxu1 %v2013_v1  ;;  %v1979_v1 = vld [vmem:[%s2609_s3 + $0xd0] ss:$8 sps:$4 sm:$0xff]  }
  0x40   :  { %987 = vmatpush2.bf16.msra.mxu1 %v1979_v1  ;;  %1782 = vmatprep.subr.bf16.mxu0 %v1997_v29 }
  0x41   :  { %988 = vmatprep.subr.bf16.mxu1 %v1984_v10 }
  0x42   :  { %501 = vmatmul.mubr.bf16.vlgmr.msra.gmra.mxu0 %v1918_v54 }
  0x43   :  { %510 = vmatprep.mubr.bf16.mxu0 %v1922_v56  ;;  %1783 = vmatpush3.bf16.msra.mxu0 %v2352_v30  ;;  %v135_v56 = vsub.s32 0, %v2413_v53 }
  0x44   :  { %989 = vmatpush2.bf16.msra.mxu1 %v1982_v12  ;;  %1784 = vmatprep.subr.bf16.mxu0 %v2357_v31 }
  0x45   :  { %990 = vmatprep.subr.bf16.mxu1 %v1987_v17  ;;  %v2430_v60 = vrot.slane %v131_v58, %v135_v56 }
  0x46   :  { %1653 = vmatmul.mubr.msk.bf16.gmra.mxu1 %vm443_vm0, %v1945_v9 }
  0x47   :  { %1785 = vmatpush3.bf16.msra.mxu0 %v2363_v32 }
  0x48   :  { %991 = vmatpush2.bf16.msra.mxu1 %v1985_v16  ;;  %1786 = vmatprep.subr.bf16.mxu0 %v2369_v33 }
  0x49   :  { %992 = vmatprep.subr.bf16.mxu1 %v1990_v23 }
  0x4a   :  { %511 = vmatmul.mubr.bf16.gmra.mxu0 %v1924_v61 }
  0x4b   :  { %520 = vmatprep.mubr.bf16.mxu0 %v1926_v63  ;;  %1787 = vmatpush3.bf16.msra.mxu0 %v2375_v34 }
  0x4c   :  { %993 = vmatpush2.bf16.msra.mxu1 %v1988_v24  ;;  %1788 = vmatprep.subr.bf16.mxu0 %v2381_v35 }
  0x4d   :  { %994 = vmatprep.subr.bf16.mxu1 %v1993_v25 }
  0x4f   :  { %1789 = vmatpush3.bf16.msra.mxu0 %v2386_v36 }
  0x50   :  { %995 = vmatpush2.bf16.msra.mxu1 %v1991_v26  ;;  %1790 = vmatprep.subr.bf16.mxu0 %v2391_v37 }
  0x51   :  { %996 = vmatprep.subr.bf16.mxu1 %v1996_v27 }
  0x52   :  { %521 = vmatmul.mubr.bf16.gmra.mxu0 %v1928_v5 }
  0x53   :  { %530 = vmatprep.mubr.bf16.mxu0 %v1930_v7  ;;  %1791 = vmatpush3.bf16.msra.mxu0 %v2399_v38 }
  0x54   :  { %997 = vmatpush2.bf16.msra.mxu1 %v1994_v28 }
  0x55   :  { %1846 = vmatprep.subr.bf16.mxu1 %v1997_v29 }
  0x5a   :  { %531 = vmatmul.mubr.bf16.gmra.mxu0 %v1932_v11 }
  0x5b   :  { %540 = vmatprep.mubr.bf16.mxu0 %v1934_v13 }
  0x62   :  { %541 = vmatmul.mubr.bf16.gmra.mxu0 %v1936_v14 }
  0x63   :  { %550 = vmatprep.mubr.bf16.mxu0 %v1938_v15 }
  0x6a   :  { %551 = vmatmul.mubr.bf16.gmra.mxu0 %v1940_v18 }
  0x6b   :  { %560 = vmatprep.mubr.bf16.mxu0 %v1942_v19 }
  0x72   :  { %561 = vmatmul.mubr.bf16.gmra.mxu0 %v1944_v20 }
  0x73   :  { %570 = vmatprep.mubr.bf16.mxu0 %v1946_v21 }
  0x7a   :  { %571 = vmatmul.mubr.bf16.gmra.mxu0 %v1948_v22 }
  0xce   :  { %v615_v39 = vpop.f32.mrf.mxu1 }
  0xd0   :  { %v617_v40 = vpop.f32.mrf.mxu1 }
  0xd2   :  { %v619_v41 = vpop.f32.mrf.mxu1 }
  0xd4   :  { %v621_v42 = vpop.f32.mrf.mxu1 }
  0xd6   :  { %v625_v43 = vpop.f32.mrf.mxu1 }
  0xd8   :  { %v627_v44 = vpop.f32.mrf.mxu1 }
  0xda   :  { %v629_v45 = vpop.f32.mrf.mxu1 }
  0xdc   :  { %v631_v46 = vpop.f32.mrf.mxu1 }
  0xde   :  { %v2403_v47 = vpop.f32.mrf.mxu1 }
  0xe0   :  { %v2405_v48 = vpop.f32.mrf.mxu1 }
  0xe2   :  { %v2407_v49 = vpop.f32.mrf.mxu1 }
  0xe4   :  { %v2409_v50 = vpop.f32.mrf.mxu1 }
  0xe6   :  { %v2411_v52 = vpop.f32.mrf.mxu1 }
  0xe8   :  { %v2415_v54 = vpop.f32.mrf.mxu1 }
  0xea   :  { %v2419_v57 = vpop.f32.mrf.mxu1 }
  0xec   :  { %v2432_v62 = vpop.f32.mrf.mxu1 }
  0xee   :  { %v2436_v4 = vpop.f32.mrf.mxu1 }
  0xf0   :  { %v2440_v11 = vpop.f32.mrf.mxu1 }
  0xf2   :  { %v2444_v21 = vpop.f32.mrf.mxu1 }
 0x102   :  { %v502_v61 = vpop.f32.mrf.mxu0 }
 0x103   :  { %v503_v2 = vadd.f32 %v502_v61, %v2430_v60 }
 0x104   :  { %v504_v63 = vpop.f32.mrf.mxu0 }
 0x105   :  { %v505_v0 = vadd.f32 %v504_v63, %v2426_v59  ;;  %v616_v1 = vadd.f32 %v615_v39, %v503_v2 }
 0x106   :  { %v506_v3 = vpop.f32.mrf.mxu0 }
 0x107   :  { %v507_v5 = vadd.f32 %v506_v3, %v2430_v60  ;;  %v618_v7 = vadd.f32 %v617_v40, %v505_v0  ;;  %v694_v18 = vmax.f32 %v616_v1, 0.0  ;;  %v2448_v40 = vpop.f32.mrf.mxu1 }
 0x108   :  { %v508_v6 = vpop.f32.mrf.mxu0 }
 0x109   :  { %v620_v8 = vadd.f32 %v619_v41, %v507_v5  ;;  %v509_v9 = vadd.f32 %v508_v6, %v2426_v59  ;;  %v695_v15 = vmax.f32 %v618_v7, 0.0 }
 0x10a   :  { %v512_v10 = vpop.f32.mrf.mxu0 }
 0x10b   :  { %v622_v12 = vadd.f32 %v621_v42, %v509_v9  ;;  %v696_v13 = vmax.f32 %v620_v8, 0.0  ;;  %v513_v19 = vadd.f32 %v512_v10, %v2430_v60 }
 0x10c   :  { %v514_v14 = vpop.f32.mrf.mxu0 }
 0x10d   :  { %v697_v16 = vmax.f32 %v622_v12, 0.0  ;;  %v515_v17 = vadd.f32 %v514_v14, %v2426_v59  ;;  %v726_v24 = vpack.c.bf16 %v696_v13, %v694_v18  ;;  %v626_v29 = vadd.f32 %v625_v43, %v513_v19  ;;  %v2454_v43 = vpop.f32.mrf.mxu1 }
 0x10e   :  { %v516_v20 = vpop.f32.mrf.mxu0 }
 0x10f   :  { %v517_v22 = vadd.f32 %v516_v20, %v2430_v60  ;;  %v727_v23 = vpack.c.bf16 %v697_v16, %v695_v15  ;;  %v628_v26 = vadd.f32 %v627_v44, %v515_v17  ;;  %v2463_v9 = vpop.f32.mrf.mxu1 }
 0x110   :  { %v518_v25 = vpop.f32.mrf.mxu0 }
 0x111   :  { %v630_v27 = vadd.f32 %v629_v45, %v517_v22  ;;  %v519_v28 = vadd.f32 %v518_v25, %v2426_v59  ;;  %998 = vmatprep.mubr.bf16.mxu1 %v727_v23  ;;  %v699_v58 = vmax.f32 %v628_v26, 0.0  ;;  %v698_v45 = vmax.f32 %v626_v29, 0.0  ;;  %v669_v14 = vpop.f32.mrf.mxu1 }
 0x112   :  { %v522_v39 = vpop.f32.mrf.mxu0  ;;  %999 = vmatmul.mubr.bf16.vlgmr.msra.gmra.mxu1 %v726_v24 }
 0x113   :  { %v632_v41 = vadd.f32 %v631_v46, %v519_v28  ;;  %1854 = vmatpush3.bf16.msra.mxu1 %v2352_v30  ;;  %v700_v42 = vmax.f32 %v630_v27, 0.0  ;;  %v523_v63 = vadd.f32 %v522_v39, %v2430_v60  ;;  %v671_v22 = vpop.f32.mrf.mxu1 }
 0x114   :  { %v524_v51 = vpop.f32.mrf.mxu0  ;;  %1847 = vmatprep.subr.bf16.mxu1 %v2357_v31 }
 0x115   :  { %v701_v61 = vmax.f32 %v632_v41, 0.0  ;;  %v525_v44 = vadd.f32 %v524_v51, %v2426_v59  ;;  %v728_v46 = vpack.c.bf16 %v700_v42, %v698_v45  ;;  %v636_v7 = vadd.f32 %v2403_v47, %v523_v63  ;;  %v675_v28 = vpop.f32.mrf.mxu1 }
 0x116   :  { %v526_v0 = vpop.f32.mrf.mxu0 }
 0x117   :  { %v527_v2 = vadd.f32 %v526_v0, %v2430_v60  ;;  %v729_v3 = vpack.c.bf16 %v701_v61, %v699_v58  ;;  %1855 = vmatpush3.bf16.msra.mxu1 %v2363_v32  ;;  %v638_v31 = vadd.f32 %v2405_v48, %v525_v44  ;;  %v702_v12 = vmax.f32 %v636_v7, 0.0  ;;  %v677_v61 = vpop.f32.mrf.mxu1 }
 0x118   :  { %v528_v30 = vpop.f32.mrf.mxu0  ;;  %1848 = vmatprep.subr.bf16.mxu1 %v2369_v33 }
 0x119   :  { %v640_v5 = vadd.f32 %v2407_v49, %v527_v2  ;;  %v529_v6 = vadd.f32 %v528_v30, %v2426_v59  ;;  %1008 = vmatprep.mubr.bf16.mxu1 %v729_v3  ;;  %v703_v33 = vmax.f32 %v638_v31, 0.0 }
 0x11a   :  { %v532_v8 = vpop.f32.mrf.mxu0  ;;  %1009 = vmatmul.mubr.bf16.gmra.mxu1 %v728_v46  ;;  %v679_v46 = vpop.f32.mrf.mxu1 }
 0x11b   :  { %v642_v1 = vadd.f32 %v2409_v50, %v529_v6  ;;  %1856 = vmatpush3.bf16.msra.mxu1 %v2375_v34  ;;  %v704_v32 = vmax.f32 %v640_v5, 0.0  ;;  %v533_v13 = vadd.f32 %v532_v8, %v2430_v60 }
 0x11c   :  { %v534_v10 = vpop.f32.mrf.mxu0  ;;  %1849 = vmatprep.subr.bf16.mxu1 %v2381_v35 }
 0x11d   :  { %v705_v48 = vmax.f32 %v642_v1, 0.0  ;;  %v535_v49 = vadd.f32 %v534_v10, %v2426_v59  ;;  %v730_v34 = vpack.c.bf16 %v704_v32, %v702_v12  ;;  %v646_v19 = vadd.f32 %v2411_v52, %v533_v13  ;;  %v681_v10 = vpop.f32.mrf.mxu1 }
 0x11e   :  { %v536_v47 = vpop.f32.mrf.mxu0 }
 0x11f   :  { %v537_v15 = vadd.f32 %v536_v47, %v2430_v60  ;;  %v731_v16 = vpack.c.bf16 %v705_v48, %v703_v33  ;;  %1857 = vmatpush3.bf16.msra.mxu1 %v2386_v36  ;;  %v648_v35 = vadd.f32 %v2415_v54, %v535_v49  ;;  %v706_v26 = vmax.f32 %v646_v19, 0.0 }
 0x120   :  { %v538_v50 = vpop.f32.mrf.mxu0  ;;  %1850 = vmatprep.subr.bf16.mxu1 %v2391_v37 }
 0x121   :  { %v650_v17 = vadd.f32 %v2419_v57, %v537_v15  ;;  %v539_v18 = vadd.f32 %v538_v50, %v2426_v59  ;;  %1018 = vmatprep.mubr.bf16.mxu1 %v731_v16  ;;  %v707_v25 = vmax.f32 %v648_v35, 0.0 }
 0x122   :  { %v542_v20 = vpop.f32.mrf.mxu0  ;;  %1019 = vmatmul.mubr.bf16.gmra.mxu1 %v730_v34 }
 0x123   :  { %v652_v23 = vadd.f32 %v2432_v62, %v539_v18  ;;  %1858 = vmatpush3.bf16.msra.mxu1 %v2399_v38  ;;  %v708_v36 = vmax.f32 %v650_v17, 0.0  ;;  %v543_v57 = vadd.f32 %v542_v20, %v2430_v60 }
 0x124   :  { %v544_v24 = vpop.f32.mrf.mxu0 }
 0x125   :  { %v709_v37 = vmax.f32 %v652_v23, 0.0  ;;  %v545_v54 = vadd.f32 %v544_v24, %v2426_v59  ;;  %v732_v41 = vpack.c.bf16 %v708_v36, %v706_v26  ;;  %v656_v51 = vadd.f32 %v2436_v4, %v543_v57 }
 0x126   :  { %v546_v27 = vpop.f32.mrf.mxu0 }
 0x127   :  { %v547_v52 = vadd.f32 %v546_v27, %v2430_v60  ;;  %v733_v29 = vpack.c.bf16 %v709_v37, %v707_v25  ;;  %v658_v62 = vadd.f32 %v2440_v11, %v545_v54  ;;  %v710_v30 = vmax.f32 %v656_v51, 0.0 }
 0x128   :  { %v548_v39 = vpop.f32.mrf.mxu0 }
 0x129   :  { %v660_v38 = vadd.f32 %v2444_v21, %v547_v52  ;;  %v549_v42 = vadd.f32 %v548_v39, %v2426_v59  ;;  %1028 = vmatprep.mubr.bf16.mxu1 %v733_v29  ;;  %v711_v0 = vmax.f32 %v658_v62, 0.0 }
 0x12a   :  { %v552_v58 = vpop.f32.mrf.mxu0  ;;  %1029 = vmatmul.mubr.bf16.gmra.mxu1 %v732_v41 }
 0x12b   :  { %v662_v44 = vadd.f32 %v2448_v40, %v549_v42  ;;  %v712_v45 = vmax.f32 %v660_v38, 0.0  ;;  %v553_v11 = vadd.f32 %v552_v58, %v2430_v60 }
 0x12c   :  { %v554_v63 = vpop.f32.mrf.mxu0 }
 0x12d   :  { %v713_v2 = vmax.f32 %v662_v44, 0.0  ;;  %v555_v3 = vadd.f32 %v554_v63, %v2426_v59  ;;  %v734_v6 = vpack.c.bf16 %v712_v45, %v710_v30  ;;  %v666_v1 = vadd.f32 %v2454_v43, %v553_v11  ;;  %v2009_v11 = vld [vmem:[%s2610_s5 + $0x48] sm:$0xff]  }
 0x12e   :  { %v556_v21 = vpop.f32.mrf.mxu0 }
 0x12f   :  { %v557_v31 = vadd.f32 %v556_v21, %v2430_v60  ;;  %v735_v5 = vpack.c.bf16 %v713_v2, %v711_v0  ;;  %v668_v7 = vadd.f32 %v2463_v9, %v555_v3  ;;  %v714_v15 = vmax.f32 %v666_v1, 0.0  ;;  %v2010_v21 = vld [vmem:[%s2610_s5 + $0x8] sm:$0xff]  }
 0x130   :  { %v558_v4 = vpop.f32.mrf.mxu0 }
 0x131   :  { %v670_v8 = vadd.f32 %v669_v14, %v557_v31  ;;  %v559_v40 = vadd.f32 %v558_v4, %v2426_v59  ;;  %1038 = vmatprep.mubr.bf16.mxu1 %v735_v5  ;;  %v715_v12 = vmax.f32 %v668_v7, 0.0  ;;  %v685_v14 = vpop.f32.mrf.mxu1  ;;  %v2012_v31 = vld [vmem:[%s2610_s5] sm:$0xff]  }
 0x132   :  { %v562_v32 = vpop.f32.mrf.mxu0  ;;  %1039 = vmatmul.mubr.bf16.gmra.mxu1 %v734_v6  ;;  %v1178_v5 = vld [vmem:[%s2612_s4] sm:$0x3] }
 0x133   :  { %v672_v33 = vadd.f32 %v671_v22, %v559_v40  ;;  %v716_v48 = vmax.f32 %v670_v8, 0.0  ;;  %v563_v16 = vadd.f32 %v562_v32, %v2430_v60  ;;  %v687_v22 = vpop.f32.mrf.mxu1  ;;  %v2524_v6 = vrot.slane %v1178_v5, %v139_v55 }
 0x134   :  { %v564_v49 = vpop.f32.mrf.mxu0  ;;  %v2528_v7 = vrot.slane %v1178_v5, %v135_v56 }
 0x135   :  { %v717_v13 = vmax.f32 %v672_v33, 0.0  ;;  %v565_v47 = vadd.f32 %v564_v49, %v2426_v59  ;;  %v736_v43 = vpack.c.bf16 %v716_v48, %v714_v15  ;;  %v676_v20 = vadd.f32 %v675_v28, %v563_v16  ;;  %v689_v52 = vpop.f32.mrf.mxu1 }
 0x136   :  { %v566_v9 = vpop.f32.mrf.mxu0 }
 0x137   :  { %v567_v50 = vadd.f32 %v566_v9, %v2430_v60  ;;  %v737_v34 = vpack.c.bf16 %v717_v13, %v715_v12  ;;  %v678_v17 = vadd.f32 %v677_v61, %v565_v47  ;;  %v718_v57 = vmax.f32 %v676_v20, 0.0  ;;  %v691_v61 = vpop.f32.mrf.mxu1 }
 0x138   :  { %v568_v35 = vpop.f32.mrf.mxu0 }
 0x139   :  { %v680_v18 = vadd.f32 %v679_v46, %v567_v50  ;;  %v569_v19 = vadd.f32 %v568_v35, %v2426_v59  ;;  %1048 = vmatprep.mubr.bf16.mxu1 %v737_v34  ;;  %v719_v37 = vmax.f32 %v678_v17, 0.0  ;;  %v2011_v46 = vld [vmem:[%s2610_s5 + $0x40] sm:$0xff]  }
 0x13a   :  { %v572_v23 = vpop.f32.mrf.mxu0  ;;  %1049 = vmatmul.mubr.bf16.gmra.mxu1 %v736_v43 }
 0x13b   :  { %v682_v36 = vadd.f32 %v681_v10, %v569_v19  ;;  %v720_v24 = vmax.f32 %v680_v18, 0.0  ;;  %v573_v27 = vadd.f32 %v572_v23, %v2430_v60 }
 0x13c   :  { %v574_v25 = vpop.f32.mrf.mxu0 }
 0x13d   :  { %v721_v54 = vmax.f32 %v682_v36, 0.0  ;;  %v575_v26 = vadd.f32 %v574_v25, %v2426_v59  ;;  %v738_v28 = vpack.c.bf16 %v720_v24, %v718_v57  ;;  %v686_v58 = vadd.f32 %v685_v14, %v573_v27 }
 0x13e   :  { %v576_v29 = vpop.f32.mrf.mxu0 }
 0x13f   :  { %v577_v39 = vadd.f32 %v576_v29, %v2430_v60  ;;  %v739_v41 = vpack.c.bf16 %v721_v54, %v719_v37  ;;  %v688_v38 = vadd.f32 %v687_v22, %v575_v26  ;;  %v722_v2 = vmax.f32 %v686_v58, 0.0  ;;  %v2007_v60 = vld [vmem:[%s2610_s5 + $0x50] sm:$0xff]  }
 0x140   :  { %v578_v62 = vpop.f32.mrf.mxu0  ;;  %1792 = vmatprep.subr.bf16.mxu0 %v2007_v60  ;;  %1851 = vmatprep.subr.bf16.mxu1 %v2007_v60 }
 0x141   :  { %v690_v42 = vadd.f32 %v689_v52, %v577_v39  ;;  %v579_v51 = vadd.f32 %v578_v62, %v2426_v59  ;;  %1058 = vmatprep.mubr.bf16.mxu1 %v739_v41  ;;  %v723_v63 = vmax.f32 %v688_v38, 0.0  ;;  %v2008_v59 = vld [vmem:[%s2610_s5 + $0x10] sm:$0xff]  }
 0x142   :  { %1059 = vmatmul.mubr.bf16.gmra.mxu1 %v738_v28  ;;  %1793 = vmatpush3.bf16.msra.mxu0 %v2008_v59 }
 0x143   :  { %v692_v44 = vadd.f32 %v691_v61, %v579_v51  ;;  %v724_v45 = vmax.f32 %v690_v42, 0.0  ;;  %1859 = vmatpush3.bf16.msra.mxu1 %v2008_v59  ;;  %1794 = vmatprep.subr.bf16.mxu0 %v2009_v11 }
 0x144   :  { %1852 = vmatprep.subr.bf16.mxu1 %v2009_v11 }
 0x145   :  { %v725_v0 = vmax.f32 %v692_v44, 0.0  ;;  %v740_v30 = vpack.c.bf16 %v724_v45, %v722_v2 }
 0x146   :  { %1795 = vmatpush3.bf16.msra.mxu0 %v2010_v21 }
 0x147   :  { %v741_v3 = vpack.c.bf16 %v725_v0, %v723_v63  ;;  %1860 = vmatpush3.bf16.msra.mxu1 %v2010_v21  ;;  %1796 = vmatprep.subr.bf16.mxu0 %v2011_v46 }
 0x148   :  { %1853 = vmatprep.subr.bf16.mxu1 %v2011_v46 }
 0x149   :  { %1068 = vmatprep.mubr.bf16.mxu1 %v741_v3 }
 0x14a   :  { %1069 = vmatmul.mubr.bf16.gmra.mxu1 %v740_v30  ;;  %1797 = vmatpush3.bf16.msra.mxu0 %v2012_v31 }
 0x14b   :  { %1861 = vmatpush3.bf16.msra.mxu1 %v2012_v31 }
 0x1d2   :  { %v1000_v4 = vpop.f32.mrf.mxu1 }
 0x1d3   :  { %v1190_v10 = vadd.f32 %v2528_v7, %v1000_v4 }
 0x1d4   :  { %v1002_v8 = vpop.f32.mrf.mxu1 }
 0x1d5   :  { %v1191_v1 = vadd.f32 %v2524_v6, %v1002_v8  ;;  %v1222_v47 = vmax.f32 %v1190_v10, 0.0 }
 0x1d6   :  { %v1004_v40 = vpop.f32.mrf.mxu1 }
 0x1d7   :  { %v1192_v32 = vadd.f32 %v2528_v7, %v1004_v40  ;;  %v1223_v13 = vmax.f32 %v1191_v1, 0.0 }
 0x1d8   :  { %v1006_v33 = vpop.f32.mrf.mxu1 }
 0x1d9   :  { %v1193_v48 = vadd.f32 %v2524_v6, %v1006_v33  ;;  %v1224_v49 = vmax.f32 %v1192_v32, 0.0 }
 0x1da   :  { %v1010_v12 = vpop.f32.mrf.mxu1 }
 0x1db   :  { %v1225_v55 = vmax.f32 %v1193_v48, 0.0  ;;  %v1254_v56 = vpack.c.bf16 %v1224_v49, %v1222_v47  ;;  %v1194_v50 = vadd.f32 %v2528_v7, %v1010_v12 }
 0x1dc   :  { %v1012_v15 = vpop.f32.mrf.mxu1 }
 0x1dd   :  { %v1255_v53 = vpack.c.bf16 %v1225_v55, %v1223_v13  ;;  %v1195_v9 = vadd.f32 %v2524_v6, %v1012_v15  ;;  %v1226_v20 = vmax.f32 %v1194_v50, 0.0 }
 0x1de   :  { %v1014_v16 = vpop.f32.mrf.mxu1 }
 0x1df   :  { %v1196_v14 = vadd.f32 %v2528_v7, %v1014_v16  ;;  %1437 = vmatprep.mubr.bf16.mxu0 %v1255_v53  ;;  %v1227_v18 = vmax.f32 %v1195_v9, 0.0 }
 0x1e0   :  { %v1016_v34 = vpop.f32.mrf.mxu1  ;;  %1438 = vmatmul.mubr.bf16.vlgmr.msra.gmra.mxu0 %v1254_v56 }
 0x1e1   :  { %v1197_v35 = vadd.f32 %v2524_v6, %v1016_v34  ;;  %v1228_v43 = vmax.f32 %v1196_v14, 0.0 }
 0x1e2   :  { %v1020_v17 = vpop.f32.mrf.mxu1 }
 0x1e3   :  { %v1229_v19 = vmax.f32 %v1197_v35, 0.0  ;;  %v1256_v36 = vpack.c.bf16 %v1228_v43, %v1226_v20  ;;  %v1198_v54 = vadd.f32 %v2528_v7, %v1020_v17 }
 0x1e4   :  { %v1022_v22 = vpop.f32.mrf.mxu1 }
 0x1e5   :  { %v1257_v23 = vpack.c.bf16 %v1229_v19, %v1227_v18  ;;  %v1199_v25 = vadd.f32 %v2524_v6, %v1022_v22  ;;  %v1230_v41 = vmax.f32 %v1198_v54, 0.0 }
 0x1e6   :  { %v1024_v24 = vpop.f32.mrf.mxu1 }
 0x1e7   :  { %v1200_v37 = vadd.f32 %v2528_v7, %v1024_v24  ;;  %1445 = vmatprep.mubr.bf16.mxu0 %v1257_v23  ;;  %v1231_v29 = vmax.f32 %v1199_v25, 0.0 }
 0x1e8   :  { %v1026_v26 = vpop.f32.mrf.mxu1  ;;  %1446 = vmatmul.mubr.bf16.gmra.mxu0 %v1256_v36 }
 0x1e9   :  { %v1201_v57 = vadd.f32 %v2524_v6, %v1026_v26  ;;  %v1232_v27 = vmax.f32 %v1200_v37, 0.0 }
 0x1ea   :  { %v1030_v52 = vpop.f32.mrf.mxu1 }
 0x1eb   :  { %v1233_v39 = vmax.f32 %v1201_v57, 0.0  ;;  %v1258_v38 = vpack.c.bf16 %v1232_v27, %v1230_v41  ;;  %v1202_v61 = vadd.f32 %v2528_v7, %v1030_v52 }
 0x1ec   :  { %v1032_v62 = vpop.f32.mrf.mxu1 }
 0x1ed   :  { %v1259_v28 = vpack.c.bf16 %v1233_v39, %v1231_v29  ;;  %v1203_v51 = vadd.f32 %v2524_v6, %v1032_v62  ;;  %v1234_v30 = vmax.f32 %v1202_v61, 0.0 }
 0x1ee   :  { %v1034_v42 = vpop.f32.mrf.mxu1 }
 0x1ef   :  { %v1204_v58 = vadd.f32 %v2528_v7, %v1034_v42  ;;  %1453 = vmatprep.mubr.bf16.mxu0 %v1259_v28  ;;  %v1235_v2 = vmax.f32 %v1203_v51, 0.0 }
 0x1f0   :  { %v1036_v44 = vpop.f32.mrf.mxu1  ;;  %1454 = vmatmul.mubr.bf16.gmra.mxu0 %v1258_v38 }
 0x1f1   :  { %v1205_v45 = vadd.f32 %v2524_v6, %v1036_v44  ;;  %v1236_v63 = vmax.f32 %v1204_v58, 0.0 }
 0x1f2   :  { %v1040_v0 = vpop.f32.mrf.mxu1 }
 0x1f3   :  { %v1237_v3 = vmax.f32 %v1205_v45, 0.0  ;;  %v1260_v11 = vpack.c.bf16 %v1236_v63, %v1234_v30  ;;  %v1206_v5 = vadd.f32 %v2528_v7, %v1040_v0 }
 0x1f4   :  { %v1042_v60 = vpop.f32.mrf.mxu1 }
 0x1f5   :  { %v1261_v59 = vpack.c.bf16 %v1237_v3, %v1235_v2  ;;  %v1207_v46 = vadd.f32 %v2524_v6, %v1042_v60  ;;  %v1238_v33 = vmax.f32 %v1206_v5, 0.0 }
 0x1f6   :  { %v1044_v21 = vpop.f32.mrf.mxu1 }
 0x1f7   :  { %v1208_v31 = vadd.f32 %v2528_v7, %v1044_v21  ;;  %1461 = vmatprep.mubr.bf16.mxu0 %v1261_v59  ;;  %v1239_v32 = vmax.f32 %v1207_v46, 0.0 }
 0x1f8   :  { %v1046_v4 = vpop.f32.mrf.mxu1  ;;  %1462 = vmatmul.mubr.bf16.gmra.mxu0 %v1260_v11 }
 0x1f9   :  { %v1209_v8 = vadd.f32 %v2524_v6, %v1046_v4  ;;  %v1240_v40 = vmax.f32 %v1208_v31, 0.0 }
 0x1fa   :  { %v1050_v1 = vpop.f32.mrf.mxu1 }
 0x1fb   :  { %v1241_v10 = vmax.f32 %v1209_v8, 0.0  ;;  %v1262_v12 = vpack.c.bf16 %v1240_v40, %v1238_v33  ;;  %v1210_v15 = vadd.f32 %v2528_v7, %v1050_v1 }
 0x1fc   :  { %v1052_v48 = vpop.f32.mrf.mxu1 }
 0x1fd   :  { %v1263_v49 = vpack.c.bf16 %v1241_v10, %v1239_v32  ;;  %v1211_v55 = vadd.f32 %v2524_v6, %v1052_v48  ;;  %v1242_v34 = vmax.f32 %v1210_v15, 0.0 }
 0x1fe   :  { %v1054_v13 = vpop.f32.mrf.mxu1 }
 0x1ff   :  { %v1212_v47 = vadd.f32 %v2528_v7, %v1054_v13  ;;  %1469 = vmatprep.mubr.bf16.mxu0 %v1263_v49  ;;  %v1243_v14 = vmax.f32 %v1211_v55, 0.0 }
 0x200   :  { %v1056_v53 = vpop.f32.mrf.mxu1  ;;  %1470 = vmatmul.mubr.bf16.gmra.mxu0 %v1262_v12 }
 0x201   :  { %v1213_v56 = vadd.f32 %v2524_v6, %v1056_v53  ;;  %v1244_v16 = vmax.f32 %v1212_v47, 0.0 }
 0x202   :  { %v1060_v9 = vpop.f32.mrf.mxu1 }
 0x203   :  { %v1245_v50 = vmax.f32 %v1213_v56, 0.0  ;;  %v1264_v17 = vpack.c.bf16 %v1244_v16, %v1242_v34  ;;  %v1214_v22 = vadd.f32 %v2528_v7, %v1060_v9 }
 0x204   :  { %v1062_v35 = vpop.f32.mrf.mxu1 }
 0x205   :  { %v1265_v43 = vpack.c.bf16 %v1245_v50, %v1243_v14  ;;  %v1215_v19 = vadd.f32 %v2524_v6, %v1062_v35  ;;  %v1246_v26 = vmax.f32 %v1214_v22, 0.0 }
 0x206   :  { %v1064_v18 = vpop.f32.mrf.mxu1 }
 0x207   :  { %v1216_v20 = vadd.f32 %v2528_v7, %v1064_v18  ;;  %1477 = vmatprep.mubr.bf16.mxu1 %v1265_v43  ;;  %v1247_v37 = vmax.f32 %v1215_v19, 0.0 }
 0x208   :  { %v1066_v23 = vpop.f32.mrf.mxu1  ;;  %1478 = vmatmul.mubr.bf16.vlgmr.msra.gmra.mxu1 %v1264_v17 }
 0x209   :  { %v1217_v36 = vadd.f32 %v2524_v6, %v1066_v23  ;;  %v1248_v24 = vmax.f32 %v1216_v20, 0.0 }
 0x20a   :  { %v1070_v25 = vpop.f32.mrf.mxu1 }
 0x20b   :  { %v1249_v54 = vmax.f32 %v1217_v36, 0.0  ;;  %v1266_v52 = vpack.c.bf16 %v1248_v24, %v1246_v26  ;;  %v1218_v62 = vadd.f32 %v2528_v7, %v1070_v25 }
 0x20c   :  { %v1072_v57 = vpop.f32.mrf.mxu1 }
 0x20d   :  { %v1267_v27 = vpack.c.bf16 %v1249_v54, %v1247_v37  ;;  %v1219_v39 = vadd.f32 %v2524_v6, %v1072_v57  ;;  %v1250_v61 = vmax.f32 %v1218_v62, 0.0 }
 0x20e   :  { %v1074_v29 = vpop.f32.mrf.mxu1 }
 0x20f   :  { %v1220_v41 = vadd.f32 %v2528_v7, %v1074_v29  ;;  %1485 = vmatprep.mubr.bf16.mxu1 %v1267_v27  ;;  %v1251_v51 = vmax.f32 %v1219_v39, 0.0  ;;  %v2565_v7 = vld [vmem:[%s2613_s6] ss:$0 sm:$0xff] }
 0x210   :  { %v1076_v28 = vpop.f32.mrf.mxu1  ;;  %1486 = vmatmul.mubr.bf16.gmra.mxu1 %v1266_v52 }
 0x211   :  { %v1221_v38 = vadd.f32 %v2524_v6, %v1076_v28  ;;  %v1252_v42 = vmax.f32 %v1220_v41, 0.0 }
 0x213   :  { %v1253_v58 = vmax.f32 %v1221_v38, 0.0  ;;  %v1268_v45 = vpack.c.bf16 %v1252_v42, %v1250_v61 }
 0x215   :  { %v1269_v44 = vpack.c.bf16 %v1253_v58, %v1251_v51 }
 0x217   :  { %1493 = vmatprep.mubr.bf16.mxu1 %v1269_v44 }
 0x218   :  { %1494 = vmatmul.mubr.bf16.gmra.mxu1 %v1268_v45 }
 0x2a0   :  { %v1798_v63 = vpop.f32.mrf.mxu0 }
 0x2a2   :  { %v1799_v0 = vpop.f32.mrf.mxu0 }
 0x2a3   :  { %v1800_v3 = vadd.f32 %v1799_v0, %v1798_v63 }
 0x2a4   :  { %v1801_v2 = vpop.f32.mrf.mxu0 }
 0x2a5   :  { %v1440_v59 = vadd.f32 %v1800_v3, %v2565_v7 }
 0x2a6   :  { %v1802_v30 = vpop.f32.mrf.mxu0 }
 0x2a7   :  { %v1803_v60 = vadd.f32 %v1802_v30, %v1801_v2 }
 0x2a8   :  { %v1804_v6 = vpop.f32.mrf.mxu0 }
 0x2a9   :  { %v1443_v11 = vadd.f32 %v1803_v60, %v2565_v7 }
 0x2aa   :  { %v1805_v21 = vpop.f32.mrf.mxu0 }
 0x2ab   :  { %v1738_v46 = vpack.c.bf16 %v1443_v11, %v1440_v59  ;;  %v1806_v5 = vadd.f32 %v1805_v21, %v1804_v6 }
 0x2ac   :  { %v1807_v31 = vpop.f32.mrf.mxu0 }
 0x2ad   :  { %1739 = vst [vmem:[%s2614_s7] sm:$0xff] %v1738_v46   ;;  %v1448_v1 = vadd.f32 %v1806_v5, %v2565_v7 }
 0x2ae   :  { %v1808_v4 = vpop.f32.mrf.mxu0 }
 0x2af   :  { %v1809_v8 = vadd.f32 %v1808_v4, %v1807_v31 }
 0x2b0   :  { %v1810_v40 = vpop.f32.mrf.mxu0 }
 0x2b1   :  { %v1451_v32 = vadd.f32 %v1809_v8, %v2565_v7 }
 0x2b2   :  { %v1811_v10 = vpop.f32.mrf.mxu0 }
 0x2b3   :  { %v1743_v33 = vpack.c.bf16 %v1451_v32, %v1448_v1  ;;  %v1812_v49 = vadd.f32 %v1811_v10, %v1810_v40 }
 0x2b4   :  { %v1813_v48 = vpop.f32.mrf.mxu0 }
 0x2b5   :  { %1775 = vst [vmem:[%s2614_s7 + $0x8] sm:$0xff] %v1743_v33   ;;  %v1456_v47 = vadd.f32 %v1812_v49, %v2565_v7 }
 0x2b6   :  { %v1814_v12 = vpop.f32.mrf.mxu0 }
 0x2b7   :  { %v1815_v13 = vadd.f32 %v1814_v12, %v1813_v48 }
 0x2b8   :  { %v1816_v55 = vpop.f32.mrf.mxu0 }
 0x2b9   :  { %v1459_v15 = vadd.f32 %v1815_v13, %v2565_v7 }
 0x2ba   :  { %v1817_v53 = vpop.f32.mrf.mxu0 }
 0x2bb   :  { %v1748_v56 = vpack.c.bf16 %v1459_v15, %v1456_v47  ;;  %v1818_v9 = vadd.f32 %v1817_v53, %v1816_v55 }
 0x2bc   :  { %v1819_v16 = vpop.f32.mrf.mxu0 }
 0x2bd   :  { %1776 = vst [vmem:[%s2614_s7 + $0x10] sm:$0xff] %v1748_v56   ;;  %v1464_v35 = vadd.f32 %v1818_v9, %v2565_v7 }
 0x2be   :  { %v1820_v14 = vpop.f32.mrf.mxu0 }
 0x2bf   :  { %v1821_v50 = vadd.f32 %v1820_v14, %v1819_v16 }
 0x2c0   :  { %v1822_v34 = vpop.f32.mrf.mxu0 }
 0x2c1   :  { %v1467_v43 = vadd.f32 %v1821_v50, %v2565_v7 }
 0x2c2   :  { %v1823_v17 = vpop.f32.mrf.mxu0 }
 0x2c3   :  { %v1753_v18 = vpack.c.bf16 %v1467_v43, %v1464_v35  ;;  %v1824_v20 = vadd.f32 %v1823_v17, %v1822_v34 }
 0x2c4   :  { %v1825_v19 = vpop.f32.mrf.mxu0 }
 0x2c5   :  { %1777 = vst [vmem:[%s2614_s7 + $0x18] sm:$0xff] %v1753_v18   ;;  %v1472_v24 = vadd.f32 %v1824_v20, %v2565_v7 }
 0x2c6   :  { %v1826_v22 = vpop.f32.mrf.mxu0 }
 0x2c7   :  { %v1827_v23 = vadd.f32 %v1826_v22, %v1825_v19 }
 0x2c8   :  { %v1828_v36 = vpop.f32.mrf.mxu1 }
 0x2c9   :  { %v1475_v25 = vadd.f32 %v1827_v23, %v2565_v7 }
 0x2ca   :  { %v1829_v37 = vpop.f32.mrf.mxu1 }
 0x2cb   :  { %v1758_v54 = vpack.c.bf16 %v1475_v25, %v1472_v24  ;;  %v1830_v57 = vadd.f32 %v1829_v37, %v1828_v36 }
 0x2cc   :  { %v1831_v26 = vpop.f32.mrf.mxu1 }
 0x2cd   :  { %1778 = vst [vmem:[%s2614_s7 + $0x20] sm:$0xff] %v1758_v54   ;;  %v1480_v39 = vadd.f32 %v1830_v57, %v2565_v7 }
 0x2ce   :  { %v1832_v27 = vpop.f32.mrf.mxu1 }
 0x2cf   :  { %v1833_v52 = vadd.f32 %v1832_v27, %v1831_v26 }
 0x2d0   :  { %v1834_v29 = vpop.f32.mrf.mxu1 }
 0x2d1   :  { %v1483_v41 = vadd.f32 %v1833_v52, %v2565_v7 }
 0x2d2   :  { %v1835_v62 = vpop.f32.mrf.mxu1 }
 0x2d3   :  { %v1763_v28 = vpack.c.bf16 %v1483_v41, %v1480_v39  ;;  %v1836_v42 = vadd.f32 %v1835_v62, %v1834_v29 }
 0x2d4   :  { %v1837_v38 = vpop.f32.mrf.mxu1 }
 0x2d5   :  { %1779 = vst [vmem:[%s2614_s7 + $0x28] sm:$0xff] %v1763_v28   ;;  %v1488_v44 = vadd.f32 %v1836_v42, %v2565_v7 }
 0x2d6   :  { %v1838_v51 = vpop.f32.mrf.mxu1 }
 0x2d7   :  { %v1839_v58 = vadd.f32 %v1838_v51, %v1837_v38 }
 0x2d8   :  { %v1840_v61 = vpop.f32.mrf.mxu1 }
 0x2d9   :  { %v1491_v45 = vadd.f32 %v1839_v58, %v2565_v7 }
 0x2da   :  { %v1841_v63 = vpop.f32.mrf.mxu1 }
 0x2db   :  { %v1768_v0 = vpack.c.bf16 %v1491_v45, %v1488_v44  ;;  %v1842_v3 = vadd.f32 %v1841_v63, %v1840_v61 }
 0x2dc   :  { %v1843_v2 = vpop.f32.mrf.mxu1 }
 0x2dd   :  { %1780 = vst [vmem:[%s2614_s7 + $0x30] sm:$0xff] %v1768_v0   ;;  %v1496_v6 = vadd.f32 %v1842_v3, %v2565_v7 }
 0x2de   :  { %v1844_v30 = vpop.f32.mrf.mxu1 }
 0x2df   :  { %v1845_v60 = vadd.f32 %v1844_v30, %v1843_v2 }
 0x2e1   :  { %v1499_v59 = vadd.f32 %v1845_v60, %v2565_v7 }
 0x2e3   :  { %v1773_v11 = vpack.c.bf16 %v1499_v59, %v1496_v6 }
 0x2e5   :  { %1781 = vst [vmem:[%s2614_s7 + $0x38] sm:$0xff] %v1773_v11  }

// kernel: deeplabv1_caffe_forward.7
= control target key start
LH: loop header
LB: loop body
LE: loop exit
PB: predicated region body
PF: predicated region fallthrough
CT: control target
= control target key end

     0   :  { %7 = vsyncpa [#allocation3], 0  ;;  %s1540_s0 = inlined_call_operand.vmem [shape: bf16[1024,8], index: 0, kind: input, shape index: {}]   ;;  %s1541_s1 = inlined_call_operand.vmem [shape: bf16[8,64], index: 1, kind: input, shape index: {}]   ;;  %s1542_s2 = inlined_call_operand.hbm [shape: f32[1024,64], index: 2, kind: output, shape index: {}]  }
   0x1   :  { %9 = vsyncpa [#allocation3 + $0x1], 0  ;;  %s1235_s9 = smov 0   ;;  %s1237_s10 = smov 0  }
   0x2   :  { %s1239_s11 = smov 0   ;;  %s1241_s12 = smov 0  }
   0x3 LB: > { %s1256_s13 = sadd.s32 4294967295, %s1215_s12   ;;  %s902_s14 = sadd.s32 4294967294, %s1215_s12   ;;  %s1215_s12 = sphi %s1241_s12, %s1548_s12   ;;  %s1211_s11 = sphi %s1239_s11, %s1547_s11   ;;  %s1207_s10 = sphi %s1237_s10, %s1546_s10   ;;  %s1203_s9 = sphi %s1235_s9, %s1545_s9  }
   0x4   : > { %s1260_s15 = sadd.s32 1, %s1215_s12   ;;  %s69_s16 = sadd.s32 1, %s1211_s11 }
   0x5   : > { %s66_s17 = ssub.s32 %s1215_s12, %s1260_s15  ;;  %p79_p0 = scmp.ne.s32.totalorder %s1211_s11, %s1207_s10 }
   0x6   : > { %p67_p1 = scmp.eq.s32.totalorder %s66_s17, 0  ;;  %p80_p2 = scmp.eq.s32.totalorder %s1256_s13, 1 }
   0x7   : > { %p85_p3 = scmp.ne.s32.totalorder %s1207_s10, %s1203_s9  ;;  %p86_p4 = scmp.eq.s32.totalorder %s902_s14, 1 }
   0x8   : > { %s1271_s18 = scalar_select %p67_p1, %s1211_s11, %s69_s16  }
   0x9   : > { %p1273_p5 = por %p80_p2, %p79_p0  ;;  %p1277_p6 = por %p86_p4, %p85_p3 }
   0xa   : > { %p905_p7 = scmp.ge.s32.totalorder %s1215_s12, 1  ;;  %p116_p8 = scmp.lt.s32.totalorder %s1215_s12, 3 }
   0xc   : > { %p117_p9 = pnand %p905_p7, %p116_p8 }
   0xd   : > { %s907_s23 = sshll.u32 (!%p117_p9), %s1256_s13, 6  ;;  %s135_s28 = sand.u32 (!%p117_p9), 1, %s1207_s10  }
   0xe   : > { %120 = sbr.rel (%p117_p9) target bundleno = 294 (0x126), region = 28  ;;  %p139_p10 = scmp.lt.s32.totalorder (!%p117_p9), %s907_s23, 127 }
   0xf   : > { %s906_s29 = sshll.u32 (!%p117_p9), %s135_s28, 9  ;;  %s978_s3 = sshll.u32 (!%p117_p9), %s1256_s13, 13 }
  0x10   : > { %s1359_s30 = scalar_lea.vmem (!%p117_p9), [#allocation2], %s906_s29  ;;  %s1488_s7 = scalar_lea.hbm (!%p117_p9), %s1542_s2, %s978_s3 }
  0x11   : > { %s840_s4 = sshll.u32 (!%p117_p9), %s1359_s30, 4  ;;  %s1500_s8 = scalar_lea.sflag (!%p117_p9), [#allocation3], %s135_s28  ;;  %s1490_s4 = int_to_ptr.vmem [resolvable:$true] %s840_s4 }
  0x12   : > { %s1155_s13 = scalar_lea.vmem (!%p117_p9), %s1490_s4, 8192  ;;  %s1217_s14 = smov (!%p117_p9), [#allocation2]  }
  0x13   : > { %v210_v0 = vld [vmem:[%s1541_s1] sm:$0xf]  ;;  %vm468_vm0 = vcmask 1043456   ;;  %s1550_s23 = smov (!%p139_p10, %s907_s23), 127  ;;  %vm371_vm1 = vcmask 64512   ;;  %vm761_vm2 = vcmask 523264   ;;  %p1156_p11 = scmp.ne.s32.totalorder %s1490_s4, %s1155_s13 }
  0x14   : > { %1080 = vmatprep.subr.msk.bf16.mxu0 %vm468_vm0, %v210_v0  ;;  %1081 = vmatprep.subr.msk.bf16.mxu1 %vm468_vm0, %v210_v0  ;;  %v470_v1 = vsel %vm468_vm0, %v210_v0, 0  ;;  %s908_s24 = sshll.u32 %s1550_s23, 2  ;;  %s1159_s16 = sshll.u32 %s1217_s14, 4  ;;  %s1160_s16 = int_to_ptr.vmem [resolvable:$false] %s1159_s16 }
  0x15   : > { %1013 = vmatpush3.bf16.msra.mxu0 %v470_v1  ;;  %1079 = vmatpush3.bf16.msra.mxu1 %v470_v1  ;;  %s1290_s27 = scalar_lea.vmem %s1540_s0, %s908_s24  ;;  %p1157_p12 = pnand %p1156_p11, %p1273_p5 }
  0x16   : > { %v1123_v2 = vld [vmem:[%s1290_s27] sm:$0xff]   ;;  %v1125_v4 = vld [vmem:[%s1290_s27 + $0x8] sm:$0xff]   ;;  %v1127_v6 = vld [vmem:[%s1290_s27 + $0x10] sm:$0xff]   ;;  %s1161_s17 = scalar_lea.vmem %s1160_s16, 16384  ;;  %p1162_p0 = scmp.lt.s32.totalorder %s1490_s4, %s1160_s16 }
  0x17   : > { %v1124_v3 = vld [vmem:[%s1290_s27 + $0x80] sm:$0xff]   ;;  %1014 = vmatprep.mubr.msk.bf16.mxu0 %vm371_vm1, %v1123_v2  ;;  %v1126_v5 = vld [vmem:[%s1290_s27 + $0x88] sm:$0xff]   ;;  %v1128_v7 = vld [vmem:[%s1290_s27 + $0x90] sm:$0xff]   ;;  %p1158_p13 = pneg %p1157_p12  ;;  %p1163_p1 = scmp.lt.s32.totalorder %s1161_s17, %s1155_s13 }
  0x18   : > { %1046 = vmatprep.mubr.msk.bf16.mxu1 %vm371_vm1, %v1124_v3  ;;  %1015 = vmatmul.mubr.msk.bf16.vlgmr.msra.gmra.mxu0 %vm371_vm1, %v1125_v4  ;;  %v1129_v8 = vld [vmem:[%s1290_s27 + $0x18] sm:$0xff]   ;;  %v1131_v10 = vld [vmem:[%s1290_s27 + $0x20] sm:$0xff]   ;;  %v1133_v12 = vld [vmem:[%s1290_s27 + $0x28] sm:$0xff]  }
  0x19   : > { %1047 = vmatmul.mubr.msk.bf16.vlgmr.msra.gmra.mxu1 %vm371_vm1, %v1126_v5  ;;  %1018 = vmatprep.mubr.msk.bf16.mxu0 %vm371_vm1, %v1127_v6  ;;  %v1130_v9 = vld [vmem:[%s1290_s27 + $0x98] sm:$0xff]   ;;  %v1132_v11 = vld [vmem:[%s1290_s27 + $0xa0] sm:$0xff]   ;;  %v1134_v13 = vld [vmem:[%s1290_s27 + $0xa8] sm:$0xff]   ;;  %p1164_p2 = por %p1163_p1, %p1162_p0 }
  0x1a   : > { %1050 = vmatprep.mubr.msk.bf16.mxu1 %vm371_vm1, %v1128_v7  ;;  %v1135_v14 = vld [vmem:[%s1290_s27 + $0x30] sm:$0xff]   ;;  %v1137_v16 = vld [vmem:[%s1290_s27 + $0x38] sm:$0xff]   ;;  %v1139_v18 = vld [vmem:[%s1290_s27 + $0x40] sm:$0xff]  }
  0x1b   : > { %v1136_v15 = vld [vmem:[%s1290_s27 + $0xb0] sm:$0xff]   ;;  %v1138_v17 = vld [vmem:[%s1290_s27 + $0xb8] sm:$0xff]   ;;  %v1140_v19 = vld [vmem:[%s1290_s27 + $0xc0] sm:$0xff]   ;;  %p1165_p3 = pnand %p1164_p2, %p1158_p13 }
  0x1c   : > { %v1141_v20 = vld [vmem:[%s1290_s27 + $0x48] sm:$0xff]   ;;  %v1143_v22 = vld [vmem:[%s1290_s27 + $0x50] sm:$0xff]   ;;  %v1145_v24 = vld [vmem:[%s1290_s27 + $0x58] sm:$0xff]  }
  0x1d   : > { %v1142_v21 = vld [vmem:[%s1290_s27 + $0xc8] sm:$0xff]   ;;  %v1144_v23 = vld [vmem:[%s1290_s27 + $0xd0] sm:$0xff]   ;;  %v1146_v25 = vld [vmem:[%s1290_s27 + $0xd8] sm:$0xff]  }
  0x1e   : > { %v1147_v26 = vld [vmem:[%s1290_s27 + $0x60] sm:$0xff]   ;;  %v1149_v28 = vld [vmem:[%s1290_s27 + $0x68] sm:$0xff]   ;;  %v1151_v30 = vld [vmem:[%s1290_s27 + $0x70] sm:$0xff]  }
  0x1f   : > { %v1148_v27 = vld [vmem:[%s1290_s27 + $0xe0] sm:$0xff]   ;;  %v1150_v29 = vld [vmem:[%s1290_s27 + $0xe8] sm:$0xff]   ;;  %v1152_v31 = vld [vmem:[%s1290_s27 + $0xf0] sm:$0xff]  }
  0x20   : > { %1019 = vmatmul.mubr.msk.bf16.gmra.mxu0 %vm371_vm1, %v1129_v8  ;;  %v1153_v32 = vld [vmem:[%s1290_s27 + $0x78] sm:$0xff]  }
  0x21   : > { %1051 = vmatmul.mubr.msk.bf16.gmra.mxu1 %vm371_vm1, %v1130_v9  ;;  %1022 = vmatprep.mubr.msk.bf16.mxu0 %vm371_vm1, %v1131_v10  ;;  %v1154_v33 = vld [vmem:[%s1290_s27 + $0xf8] sm:$0xff]  }
  0x22   : > { %1054 = vmatprep.mubr.msk.bf16.mxu1 %vm371_vm1, %v1132_v11 }
  0x28   : > { %1023 = vmatmul.mubr.msk.bf16.gmra.mxu0 %vm371_vm1, %v1133_v12 }
  0x29   : > { %1055 = vmatmul.mubr.msk.bf16.gmra.mxu1 %vm371_vm1, %v1134_v13  ;;  %1026 = vmatprep.mubr.msk.bf16.mxu0 %vm371_vm1, %v1135_v14 }
  0x2a   : > { %1058 = vmatprep.mubr.msk.bf16.mxu1 %vm371_vm1, %v1136_v15 }
  0x30   : > { %1027 = vmatmul.mubr.msk.bf16.gmra.mxu0 %vm371_vm1, %v1137_v16 }
  0x31   : > { %1059 = vmatmul.mubr.msk.bf16.gmra.mxu1 %vm371_vm1, %v1138_v17  ;;  %1030 = vmatprep.mubr.msk.bf16.mxu0 %vm371_vm1, %v1139_v18 }
  0x32   : > { %1062 = vmatprep.mubr.msk.bf16.mxu1 %vm371_vm1, %v1140_v19 }
  0x38   : > { %1031 = vmatmul.mubr.msk.bf16.gmra.mxu0 %vm371_vm1, %v1141_v20 }
  0x39   : > { %1063 = vmatmul.mubr.msk.bf16.gmra.mxu1 %vm371_vm1, %v1142_v21  ;;  %1034 = vmatprep.mubr.msk.bf16.mxu0 %vm371_vm1, %v1143_v22 }
  0x3a   : > { %1066 = vmatprep.mubr.msk.bf16.mxu1 %vm371_vm1, %v1144_v23 }
  0x40   : > { %1035 = vmatmul.mubr.msk.bf16.gmra.mxu0 %vm371_vm1, %v1145_v24 }
  0x41   : > { %1067 = vmatmul.mubr.msk.bf16.gmra.mxu1 %vm371_vm1, %v1146_v25  ;;  %1038 = vmatprep.mubr.msk.bf16.mxu0 %vm371_vm1, %v1147_v26 }
  0x42   : > { %1070 = vmatprep.mubr.msk.bf16.mxu1 %vm371_vm1, %v1148_v27 }
  0x48   : > { %1039 = vmatmul.mubr.msk.bf16.gmra.mxu0 %vm371_vm1, %v1149_v28 }
  0x49   : > { %1071 = vmatmul.mubr.msk.bf16.gmra.mxu1 %vm371_vm1, %v1150_v29  ;;  %1042 = vmatprep.mubr.msk.bf16.mxu0 %vm371_vm1, %v1151_v30 }
  0x4a   : > { %1074 = vmatprep.mubr.msk.bf16.mxu1 %vm371_vm1, %v1152_v31 }
  0x50   : > { %1043 = vmatmul.mubr.msk.bf16.gmra.mxu0 %vm371_vm1, %v1153_v32 }
  0x51   : > { %1075 = vmatmul.mubr.msk.bf16.gmra.mxu1 %vm371_vm1, %v1154_v33 }
  0xd8   : > { %v1016_v34 = vpop.f32.mrf.mxu0 }
  0xd9   : > { %764 = vst.msk [vmem:[%s1359_s30 + $0x10] sm:$0xff] %vm761_vm2, %v1016_v34  ;;  %v1048_v35 = vpop.f32.mrf.mxu1 }
  0xda   : > { %796 = vst.msk [vmem:[%s1359_s30 + $0x110] sm:$0xff] %vm761_vm2, %v1048_v35  ;;  %v506_v36 = vpop.f32.mrf.mxu0 }
  0xdb   : > { %762 = vst.msk [vmem:[%s1359_s30] sm:$0xff] %vm761_vm2, %v506_v36  ;;  %v634_v37 = vpop.f32.mrf.mxu1 }
  0xdc   : > { %794 = vst.msk [vmem:[%s1359_s30 + $0x100] sm:$0xff] %vm761_vm2, %v634_v37  ;;  %v1017_v38 = vpop.f32.mrf.mxu0 }
  0xdd   : > { %765 = vst.msk [vmem:[%s1359_s30 + $0x18] sm:$0xff] %vm761_vm2, %v1017_v38  ;;  %v1049_v39 = vpop.f32.mrf.mxu1 }
  0xde   : > { %797 = vst.msk [vmem:[%s1359_s30 + $0x118] sm:$0xff] %vm761_vm2, %v1049_v39  ;;  %v509_v40 = vpop.f32.mrf.mxu0 }
  0xdf   : > { %763 = vst.msk [vmem:[%s1359_s30 + $0x8] sm:$0xff] %vm761_vm2, %v509_v40  ;;  %v637_v41 = vpop.f32.mrf.mxu1 }
  0xe0   : > { %795 = vst.msk [vmem:[%s1359_s30 + $0x108] sm:$0xff] %vm761_vm2, %v637_v41  ;;  %v1020_v42 = vpop.f32.mrf.mxu0 }
  0xe1   : > { %768 = vst.msk [vmem:[%s1359_s30 + $0x30] sm:$0xff] %vm761_vm2, %v1020_v42  ;;  %v1052_v43 = vpop.f32.mrf.mxu1 }
  0xe2   : > { %800 = vst.msk [vmem:[%s1359_s30 + $0x130] sm:$0xff] %vm761_vm2, %v1052_v43  ;;  %v522_v44 = vpop.f32.mrf.mxu0 }
  0xe3   : > { %766 = vst.msk [vmem:[%s1359_s30 + $0x20] sm:$0xff] %vm761_vm2, %v522_v44  ;;  %v650_v45 = vpop.f32.mrf.mxu1 }
  0xe4   : > { %798 = vst.msk [vmem:[%s1359_s30 + $0x120] sm:$0xff] %vm761_vm2, %v650_v45  ;;  %v1021_v46 = vpop.f32.mrf.mxu0 }
  0xe5   : > { %769 = vst.msk [vmem:[%s1359_s30 + $0x38] sm:$0xff] %vm761_vm2, %v1021_v46  ;;  %v1053_v47 = vpop.f32.mrf.mxu1 }
  0xe6   : > { %801 = vst.msk [vmem:[%s1359_s30 + $0x138] sm:$0xff] %vm761_vm2, %v1053_v47  ;;  %v525_v48 = vpop.f32.mrf.mxu0 }
  0xe7   : > { %767 = vst.msk [vmem:[%s1359_s30 + $0x28] sm:$0xff] %vm761_vm2, %v525_v48  ;;  %v653_v49 = vpop.f32.mrf.mxu1 }
  0xe8   : > { %799 = vst.msk [vmem:[%s1359_s30 + $0x128] sm:$0xff] %vm761_vm2, %v653_v49  ;;  %v1024_v50 = vpop.f32.mrf.mxu0 }
  0xe9   : > { %772 = vst.msk [vmem:[%s1359_s30 + $0x50] sm:$0xff] %vm761_vm2, %v1024_v50  ;;  %v1056_v51 = vpop.f32.mrf.mxu1 }
  0xea   : > { %804 = vst.msk [vmem:[%s1359_s30 + $0x150] sm:$0xff] %vm761_vm2, %v1056_v51  ;;  %v538_v52 = vpop.f32.mrf.mxu0 }
  0xeb   : > { %770 = vst.msk [vmem:[%s1359_s30 + $0x40] sm:$0xff] %vm761_vm2, %v538_v52  ;;  %v666_v53 = vpop.f32.mrf.mxu1 }
  0xec   : > { %802 = vst.msk [vmem:[%s1359_s30 + $0x140] sm:$0xff] %vm761_vm2, %v666_v53  ;;  %v1025_v54 = vpop.f32.mrf.mxu0 }
  0xed   : > { %773 = vst.msk [vmem:[%s1359_s30 + $0x58] sm:$0xff] %vm761_vm2, %v1025_v54  ;;  %v1057_v55 = vpop.f32.mrf.mxu1 }
  0xee   : > { %805 = vst.msk [vmem:[%s1359_s30 + $0x158] sm:$0xff] %vm761_vm2, %v1057_v55  ;;  %v541_v56 = vpop.f32.mrf.mxu0 }
  0xef   : > { %771 = vst.msk [vmem:[%s1359_s30 + $0x48] sm:$0xff] %vm761_vm2, %v541_v56  ;;  %v669_v57 = vpop.f32.mrf.mxu1 }
  0xf0   : > { %803 = vst.msk [vmem:[%s1359_s30 + $0x148] sm:$0xff] %vm761_vm2, %v669_v57  ;;  %v1028_v58 = vpop.f32.mrf.mxu0 }
  0xf1   : > { %776 = vst.msk [vmem:[%s1359_s30 + $0x70] sm:$0xff] %vm761_vm2, %v1028_v58  ;;  %v1060_v59 = vpop.f32.mrf.mxu1 }
  0xf2   : > { %808 = vst.msk [vmem:[%s1359_s30 + $0x170] sm:$0xff] %vm761_vm2, %v1060_v59  ;;  %v554_v60 = vpop.f32.mrf.mxu0 }
  0xf3   : > { %774 = vst.msk [vmem:[%s1359_s30 + $0x60] sm:$0xff] %vm761_vm2, %v554_v60  ;;  %v682_v61 = vpop.f32.mrf.mxu1 }
  0xf4   : > { %806 = vst.msk [vmem:[%s1359_s30 + $0x160] sm:$0xff] %vm761_vm2, %v682_v61  ;;  %v1029_v62 = vpop.f32.mrf.mxu0 }
  0xf5   : > { %777 = vst.msk [vmem:[%s1359_s30 + $0x78] sm:$0xff] %vm761_vm2, %v1029_v62  ;;  %v1061_v63 = vpop.f32.mrf.mxu1 }
  0xf6   : > { %809 = vst.msk [vmem:[%s1359_s30 + $0x178] sm:$0xff] %vm761_vm2, %v1061_v63  ;;  %v557_v0 = vpop.f32.mrf.mxu0 }
  0xf7   : > { %775 = vst.msk [vmem:[%s1359_s30 + $0x68] sm:$0xff] %vm761_vm2, %v557_v0  ;;  %v685_v1 = vpop.f32.mrf.mxu1 }
  0xf8   : > { %807 = vst.msk [vmem:[%s1359_s30 + $0x168] sm:$0xff] %vm761_vm2, %v685_v1  ;;  %v1032_v2 = vpop.f32.mrf.mxu0 }
  0xf9   : > { %780 = vst.msk [vmem:[%s1359_s30 + $0x90] sm:$0xff] %vm761_vm2, %v1032_v2  ;;  %v1064_v3 = vpop.f32.mrf.mxu1 }
  0xfa   : > { %812 = vst.msk [vmem:[%s1359_s30 + $0x190] sm:$0xff] %vm761_vm2, %v1064_v3  ;;  %v570_v4 = vpop.f32.mrf.mxu0 }
  0xfb   : > { %778 = vst.msk [vmem:[%s1359_s30 + $0x80] sm:$0xff] %vm761_vm2, %v570_v4  ;;  %v698_v5 = vpop.f32.mrf.mxu1 }
  0xfc   : > { %810 = vst.msk [vmem:[%s1359_s30 + $0x180] sm:$0xff] %vm761_vm2, %v698_v5  ;;  %v1033_v6 = vpop.f32.mrf.mxu0 }
  0xfd   : > { %781 = vst.msk [vmem:[%s1359_s30 + $0x98] sm:$0xff] %vm761_vm2, %v1033_v6  ;;  %v1065_v7 = vpop.f32.mrf.mxu1 }
  0xfe   : > { %813 = vst.msk [vmem:[%s1359_s30 + $0x198] sm:$0xff] %vm761_vm2, %v1065_v7  ;;  %v573_v8 = vpop.f32.mrf.mxu0 }
  0xff   : > { %779 = vst.msk [vmem:[%s1359_s30 + $0x88] sm:$0xff] %vm761_vm2, %v573_v8  ;;  %v701_v9 = vpop.f32.mrf.mxu1 }
 0x100   : > { %811 = vst.msk [vmem:[%s1359_s30 + $0x188] sm:$0xff] %vm761_vm2, %v701_v9  ;;  %v1036_v10 = vpop.f32.mrf.mxu0 }
 0x101   : > { %784 = vst.msk [vmem:[%s1359_s30 + $0xb0] sm:$0xff] %vm761_vm2, %v1036_v10  ;;  %v1068_v11 = vpop.f32.mrf.mxu1 }
 0x102   : > { %816 = vst.msk [vmem:[%s1359_s30 + $0x1b0] sm:$0xff] %vm761_vm2, %v1068_v11  ;;  %v586_v12 = vpop.f32.mrf.mxu0 }
 0x103   : > { %782 = vst.msk [vmem:[%s1359_s30 + $0xa0] sm:$0xff] %vm761_vm2, %v586_v12  ;;  %v714_v13 = vpop.f32.mrf.mxu1 }
 0x104   : > { %814 = vst.msk [vmem:[%s1359_s30 + $0x1a0] sm:$0xff] %vm761_vm2, %v714_v13  ;;  %v1037_v14 = vpop.f32.mrf.mxu0 }
 0x105   : > { %785 = vst.msk [vmem:[%s1359_s30 + $0xb8] sm:$0xff] %vm761_vm2, %v1037_v14  ;;  %v1069_v15 = vpop.f32.mrf.mxu1 }
 0x106   : > { %817 = vst.msk [vmem:[%s1359_s30 + $0x1b8] sm:$0xff] %vm761_vm2, %v1069_v15  ;;  %v589_v16 = vpop.f32.mrf.mxu0 }
 0x107   : > { %783 = vst.msk [vmem:[%s1359_s30 + $0xa8] sm:$0xff] %vm761_vm2, %v589_v16  ;;  %v717_v17 = vpop.f32.mrf.mxu1 }
 0x108   : > { %815 = vst.msk [vmem:[%s1359_s30 + $0x1a8] sm:$0xff] %vm761_vm2, %v717_v17  ;;  %v1040_v18 = vpop.f32.mrf.mxu0 }
 0x109   : > { %788 = vst.msk [vmem:[%s1359_s30 + $0xd0] sm:$0xff] %vm761_vm2, %v1040_v18  ;;  %v1072_v19 = vpop.f32.mrf.mxu1 }
 0x10a   : > { %820 = vst.msk [vmem:[%s1359_s30 + $0x1d0] sm:$0xff] %vm761_vm2, %v1072_v19  ;;  %v602_v20 = vpop.f32.mrf.mxu0 }
 0x10b   : > { %786 = vst.msk [vmem:[%s1359_s30 + $0xc0] sm:$0xff] %vm761_vm2, %v602_v20  ;;  %v730_v21 = vpop.f32.mrf.mxu1 }
 0x10c   : > { %818 = vst.msk [vmem:[%s1359_s30 + $0x1c0] sm:$0xff] %vm761_vm2, %v730_v21  ;;  %v1041_v22 = vpop.f32.mrf.mxu0 }
 0x10d   : > { %789 = vst.msk [vmem:[%s1359_s30 + $0xd8] sm:$0xff] %vm761_vm2, %v1041_v22  ;;  %v1073_v23 = vpop.f32.mrf.mxu1 }
 0x10e   : > { %821 = vst.msk [vmem:[%s1359_s30 + $0x1d8] sm:$0xff] %vm761_vm2, %v1073_v23  ;;  %v605_v24 = vpop.f32.mrf.mxu0 }
 0x10f   : > { %787 = vst.msk [vmem:[%s1359_s30 + $0xc8] sm:$0xff] %vm761_vm2, %v605_v24  ;;  %v733_v25 = vpop.f32.mrf.mxu1 }
 0x110   : > { %819 = vst.msk [vmem:[%s1359_s30 + $0x1c8] sm:$0xff] %vm761_vm2, %v733_v25  ;;  %v1044_v26 = vpop.f32.mrf.mxu0 }
 0x111   : > { %792 = vst.msk [vmem:[%s1359_s30 + $0xf0] sm:$0xff] %vm761_vm2, %v1044_v26  ;;  %v1076_v27 = vpop.f32.mrf.mxu1 }
 0x112   : > { %824 = vst.msk [vmem:[%s1359_s30 + $0x1f0] sm:$0xff] %vm761_vm2, %v1076_v27  ;;  %v618_v28 = vpop.f32.mrf.mxu0 }
 0x113   : > { %790 = vst.msk [vmem:[%s1359_s30 + $0xe0] sm:$0xff] %vm761_vm2, %v618_v28  ;;  %v746_v29 = vpop.f32.mrf.mxu1 }
 0x114   : > { %822 = vst.msk [vmem:[%s1359_s30 + $0x1e0] sm:$0xff] %vm761_vm2, %v746_v29  ;;  %v1045_v30 = vpop.f32.mrf.mxu0 }
 0x115   : > { %793 = vst.msk [vmem:[%s1359_s30 + $0xf8] sm:$0xff] %vm761_vm2, %v1045_v30  ;;  %v1077_v31 = vpop.f32.mrf.mxu1 }
 0x116   : > { %825 = vst.msk [vmem:[%s1359_s30 + $0x1f8] sm:$0xff] %vm761_vm2, %v1077_v31  ;;  %v621_v32 = vpop.f32.mrf.mxu0 }
 0x117   : > { %791 = vst.msk [vmem:[%s1359_s30 + $0xe8] sm:$0xff] %vm761_vm2, %v621_v32  ;;  %v749_v33 = vpop.f32.mrf.mxu1 }
 0x118   : > { %823 = vst.msk [vmem:[%s1359_s30 + $0x1e8] sm:$0xff] %vm761_vm2, %v749_v33 }
 0x119   : > { %1168 = shalt.err (!%p1165_p3)
}
 0x11a   : > { %s1169_s21 = scalar_lea.hbm %s1488_s7, 8192  ;;  %s1173_s24 = scalar_lea.hbm %s1542_s2, 16384 }
 0x11b   : > { %p1170_p4 = scmp.ne.s32.totalorder %s1488_s7, %s1169_s21  ;;  %p1174_p9 = scmp.lt.s32.totalorder %s1488_s7, %s1542_s2 }
 0x11c   : > { %p1175_p10 = scmp.lt.s32.totalorder %s1173_s24, %s1169_s21 }
 0x11d   : > { %p1171_p7 = pnand %p1170_p4, %p1273_p5 }
 0x11e   : > { %p1176_p11 = por %p1175_p10, %p1174_p9 }
 0x11f   : > { %p1172_p8 = pneg %p1171_p7 }
 0x121   : > { %p1177_p12 = pnand %p1176_p11, %p1172_p8 }
 0x123   : > { %1180 = shalt.err (!%p1177_p12)
}
 0x124   : > { %s1218_s27 = smov 128   ;;  %s1219_s28 = smov 8  }
 0x125   : > { %1082 = dma.vmem_to_hbm [thread:$0]  (%p1273_p5), %s1490_s4, 8192, %s1488_s7, %s1500_s8, %s1218_s27, %s1218_s27, %s1219_s28  }
 0x126 PF: > { %p1088_p13 = scmp.ge.s32.totalorder %s1215_s12, 2  ;;  %s855_s29 = sand.u32 1, %s1203_s9  }
 0x127   : > { %s856_s30 = scalar_lea.sflag [#allocation3], %s855_s29 }
 0x128   : > { %p1085_p0 = pnand %p1088_p13, %p1277_p6 }
 0x12a   : > { %p1086_p1 = pneg %p1085_p0 }
 0x12c   : > { %1198 = dma.done.wait (%p1086_p1), %s856_s30, 8192  }
 0x12d   : > { %1200 = vsyncadd (%p1086_p1), %s856_s30, 4294959104  ;;  %p12_p2 = scmp.ge.s32.totalorder %s1260_s15, 4   ;;  %s1545_s9 = smov %s1207_s10 }
 0x12e   : > { %s1546_s10 = smov %s1211_s11  ;;  %s1547_s11 = smov %s1271_s18 }
 0x12f   : > { %s1548_s12 = smov %s1260_s15  ;;  %14 = sbr.rel (!%p12_p2) target bundleno = 3 (0x3), region = 63 }
 0x134   :  { %861 = vsyncpa [#allocation3], 1 }
 0x135   :  { %863 = vsyncpa [#allocation3 + $0x1], 1 }

</bundles_post_ra>
